<compile_context>
chip_gen: v7x
topology: tpu7x:2x2x1
jax: 0.10.0
libtpu: 0.0.40
codegen_flags: <defaults>
</compile_context>

<pallas_src>
import jax
import jax.numpy as jnp
from jax.experimental import pallas as pl
from jax.experimental.pallas import tpu as pltpu


# -----------------------------------------------------------------------------
# Kernel
# -----------------------------------------------------------------------------
def _mlp_kernel(
    x_ref,                  # (BT, NT, 384) bf16, NLC layout (transposed+cast in wrapper)
    wc_ref, bc_ref,         # conv  (384, 512) bf16 (BN folded), (1, 512) f32
    w1_ref, b1_ref,         # fc1_1 (512, 256) bf16 (BN folded), (1, 256) f32
    w2_ref, b2_ref,         # fc1_2 (256, 64)  f32  (BN folded), (1, 64)  f32
    w3_ref, b3_ref,         # fc1_3 (64, 128)  f32  (zero-padded cols), (1, 128) f32
    out_ref,                # (BT, 128) f32  lane-dense padded output
    maxpool_ref,            # (BT, 512) f32  scratch: running max over the N axis
):
    f32 = jnp.float32
    n_idx = pl.program_id(1)
    bt, nt, cin = x_ref.shape

    # Init the running max at the first N step of this batch block.
    @pl.when(n_idx == 0)
    def _():
        maxpool_ref[...] = jnp.full_like(maxpool_ref, -jnp.inf)

    # Conv1d(384, 512, k=1) + folded BatchNorm + LeakyReLU(0.2) on this N tile:
    # one (bt*nt, 384) @ (384, 512) bf16 MXU matmul with f32 accumulation.
    x2 = x_ref[...].reshape(bt * nt, cin)                     # already bf16
    h = jnp.dot(x2, wc_ref[...], preferred_element_type=f32) + bc_ref[...]
    h = jnp.maximum(h, 0.2 * h)                               # LeakyReLU(0.2)

    # Running global max-pool over the point axis.
    maxpool_ref[...] = jnp.maximum(maxpool_ref[...],
                                   jnp.max(h.reshape(bt, nt, -1), axis=1))

    # FC head only at the last N step for this batch block.
    @pl.when(n_idx == pl.num_programs(1) - 1)
    def _():
        pooled = maxpool_ref[...].astype(w1_ref.dtype)        # bf16 for 512x256 matmul
        a = jnp.dot(pooled, w1_ref[...], preferred_element_type=f32) + b1_ref[...]
        a = jnp.maximum(a, 0.0)                               # ReLU
        a = jnp.dot(a, w2_ref[...], preferred_element_type=f32) + b2_ref[...]
        a = jnp.maximum(a, 0.0)                               # ReLU
        o = jnp.tanh(jnp.dot(a, w3_ref[...], preferred_element_type=f32) + b3_ref[...])
        out_ref[...] = o.astype(out_ref.dtype)


# -----------------------------------------------------------------------------
# Wrapper
# -----------------------------------------------------------------------------
def _full_spec(arr):
    nd = arr.ndim
    return pl.BlockSpec(arr.shape, lambda b, n, nd=nd: (0,) * nd)


def _round_up(v, m):
    return ((v + m - 1) // m) * m


def _fold_bn(w, b, gamma, beta, mean, var, eps=1e-5):
    """Fold eval-mode BatchNorm1d into the preceding conv/linear.

    y = BN(x @ W.T + b)  ==  x @ W_f + b_f   with W_f pre-transposed to (in, out).
    """
    scale = gamma * jax.lax.rsqrt(var + eps)                  # (out,)
    w_f = (w * scale[:, None]).T                              # (in, out)
    b_f = (b * scale + beta - mean * scale)[None, :]          # (1, out)
    return w_f, b_f


def mlp_forward(x, params, *, b_tile=32, n_tile=256, out_pad=128):
    """x: (B, 384, N) in PyTorch NCL layout  ->  (B, 3).  Call under jax.jit."""
    B, c_in, N = x.shape
    out_dim = params["w3"].shape[0]

    # ---- one-time weight prep (fold BN / transpose / pad / cast) ----
    wc, bc = _fold_bn(params["wc"], params["bc"], params["gamma_c"],
                      params["beta_c"], params["mean_c"], params["var_c"])
    w1, b1 = _fold_bn(params["w1"], params["b1"], params["gamma1"],
                      params["beta1"], params["mean1"], params["var1"])
    w2, b2 = _fold_bn(params["w2"], params["b2"], params["gamma2"],
                      params["beta2"], params["mean2"], params["var2"])
    w3 = jnp.zeros((params["w3"].shape[1], out_pad), jnp.float32)
    w3 = w3.at[:, :out_dim].set(params["w3"].T)
    b3 = jnp.zeros((1, out_pad), jnp.float32).at[:, :out_dim].set(params["b3"])

    wc = wc.astype(jnp.bfloat16)          # big matmul weights in bf16 for the MXU
    w1 = w1.astype(jnp.bfloat16)

    # ---- activations: NCL -> NLC + bf16 cast (fused under jit), pad B and N ----
    # N padded with replicas of the last point (max unchanged); batch padded with
    # replicas of the last row (sliced off after the call).
    x_nlc = jnp.transpose(x, (0, 2, 1)).astype(jnp.bfloat16)  # (B, N, 384) bf16

    bt = min(b_tile, B)
    b_pad = _round_up(B, bt)
    n_align = _round_up(N, 16)            # bf16 sublane packing -> multiple of 16
    nt = min(n_tile, n_align)
    n_pad = _round_up(n_align, nt)
    if b_pad != B or n_pad != N:
        x_nlc = jnp.pad(x_nlc, ((0, b_pad - B), (0, n_pad - N), (0, 0)), mode="edge")

    weights = [wc, bc, w1, b1, w2, b2, w3, b3]
    in_specs = [pl.BlockSpec((bt, nt, c_in), lambda b, n: (b, n, 0))]
    in_specs += [_full_spec(w) for w in weights]

    flops = (2 * b_pad * n_pad * c_in * 512
             + 2 * b_pad * (512 * 256 + 256 * 64 + 64 * out_pad))
    bytes_accessed = (x_nlc.size * 2
                      + sum(int(w.size) * w.dtype.itemsize for w in weights)
                      + b_pad * out_pad * 4)
    cost = pl.CostEstimate(flops=flops, transcendentals=b_pad * out_pad,
                           bytes_accessed=bytes_accessed)

    out = pl.pallas_call(
        _mlp_kernel,
        out_shape=jax.ShapeDtypeStruct((b_pad, out_pad), jnp.float32),
        grid=(b_pad // bt, n_pad // nt),
        in_specs=in_specs,
        out_specs=pl.BlockSpec((bt, out_pad), lambda b, n: (b, 0)),
        scratch_shapes=[pltpu.VMEM((bt, 512), jnp.float32)],
        compiler_params=pltpu.CompilerParams(
            dimension_semantics=("parallel", "arbitrary"),
            vmem_limit_bytes=64 * 1024 * 1024),
        cost_estimate=cost,
    )(x_nlc, *weights)
    return out[:B, :out_dim]


# -----------------------------------------------------------------------------
# Plain-JAX reference (unfused, f32) for a sanity check
# -----------------------------------------------------------------------------
def mlp_reference(x, params, eps=1e-5):
    def bn(v, g, b, m, var):
        return (v - m) * jax.lax.rsqrt(var + eps) * g + b

    x_nlc = jnp.transpose(x, (0, 2, 1))                       # (B, N, 384)
    h = jnp.einsum("bnc,oc->bno", x_nlc, params["wc"]) + params["bc"]
    h = bn(h, params["gamma_c"], params["beta_c"], params["mean_c"], params["var_c"])
    h = jnp.where(h > 0, h, 0.2 * h)                          # LeakyReLU(0.2)
    pooled = jnp.max(h, axis=1)                               # (B, 512)
    a = pooled @ params["w1"].T + params["b1"]
    a = jnp.maximum(bn(a, params["gamma1"], params["beta1"],
                       params["mean1"], params["var1"]), 0.0)
    a = a @ params["w2"].T + params["b2"]
    a = jnp.maximum(bn(a, params["gamma2"], params["beta2"],
                       params["mean2"], params["var2"]), 0.0)
    return jnp.tanh(a @ params["w3"].T + params["b3"])


# -----------------------------------------------------------------------------
# Deterministic parameter construction (shapes match MLP.__init__)
# -----------------------------------------------------------------------------
def make_params(key):
    ks = iter(jax.random.split(key, 24))
    nrm = lambda shape, s=0.05: s * jax.random.normal(next(ks), shape, jnp.float32)
    pos = lambda shape: 0.5 + jax.random.uniform(next(ks), shape, dtype=jnp.float32)

    return {
        # conv: Conv1d(384, 512, 1) + BatchNorm1d(512)
        "wc": nrm((512, 384)), "bc": nrm((512,)),
        "gamma_c": pos((512,)), "beta_c": nrm((512,)),
        "mean_c": nrm((512,)), "var_c": pos((512,)),
        # fc1_1: Linear(512, 256) + bn1_11
        "w1": nrm((256, 512)), "b1": nrm((256,)),
        "gamma1": pos((256,)), "beta1": nrm((256,)),
        "mean1": nrm((256,)), "var1": pos((256,)),
        # fc1_2: Linear(256, 64) + bn1_22
        "w2": nrm((64, 256)), "b2": nrm((64,)),
        "gamma2": pos((64,)), "beta2": nrm((64,)),
        "mean2": nrm((64,)), "var2": pos((64,)),
        # fc1_3: Linear(64, 3)
        "w3": nrm((3, 64)), "b3": nrm((3,)),
    }


if __name__ == "__main__":
    B, N = 2, 16                         # small test shapes (channels fixed by module)
    key = jax.random.PRNGKey(0)
    kx, kp = jax.random.split(key)
    x = jax.random.normal(kx, (B, 384, N), jnp.float32)       # PyTorch NCL layout
    params = make_params(kp)

    # jit so the NCL->NLC transpose and the bf16 cast fuse into a single pass.
    fwd = jax.jit(mlp_forward)
    out = jax.block_until_ready(fwd(x, params))
    assert out.shape == (B, 3)

    ref = mlp_reference(x, params)
    assert bool(jnp.all(jnp.isfinite(out)))
    # bf16 x / conv weight / fc1_1 path inside the kernel -> loose tolerance
    assert bool(jnp.allclose(out, ref, rtol=3e-2, atol=3e-2)), (
        "max abs diff = %f" % float(jnp.max(jnp.abs(out - ref))))

    print("KERNEL_OK")
</pallas_src>

<mosaic_0001>
module attributes {stable_mosaic.version = 11 : i64} {
  func.func @_mlp_kernel(%arg0: i32, %arg1: i32, %arg2: memref<2x16x384xbf16, #tpu.memory_space<vmem>>, %arg3: memref<384x512xbf16, #tpu.memory_space<vmem>>, %arg4: memref<1x512xf32, #tpu.memory_space<vmem>>, %arg5: memref<512x256xbf16, #tpu.memory_space<vmem>>, %arg6: memref<1x256xf32, #tpu.memory_space<vmem>>, %arg7: memref<256x64xf32, #tpu.memory_space<vmem>>, %arg8: memref<1x64xf32, #tpu.memory_space<vmem>>, %arg9: memref<64x128xf32, #tpu.memory_space<vmem>>, %arg10: memref<1x128xf32, #tpu.memory_space<vmem>>, %arg11: memref<2x128xf32, #tpu.memory_space<vmem>>, %arg12: memref<2x512xf32, #tpu.memory_space<vmem>>) attributes {dimension_semantics = [#tpu.dimension_semantics<parallel>, #tpu.dimension_semantics<arbitrary>], iteration_bounds = array<i64: 1, 1>, scalar_prefetch = 0 : i64, scratch_operands = 1 : i64, tpu.core_type = #tpu.core_type<tc>, window_params = [{transform_indices = @transform_0, window_bounds = array<i64: 2, 16, 384>}, {pipeline_mode = #tpu.pipeline_mode<synchronous>, transform_indices = @transform_1, window_bounds = array<i64: 384, 512>}, {pipeline_mode = #tpu.pipeline_mode<synchronous>, transform_indices = @transform_2, window_bounds = array<i64: 1, 512>}, {pipeline_mode = #tpu.pipeline_mode<synchronous>, transform_indices = @transform_3, window_bounds = array<i64: 512, 256>}, {pipeline_mode = #tpu.pipeline_mode<synchronous>, transform_indices = @transform_4, window_bounds = array<i64: 1, 256>}, {pipeline_mode = #tpu.pipeline_mode<synchronous>, transform_indices = @transform_5, window_bounds = array<i64: 256, 64>}, {pipeline_mode = #tpu.pipeline_mode<synchronous>, transform_indices = @transform_6, window_bounds = array<i64: 1, 64>}, {pipeline_mode = #tpu.pipeline_mode<synchronous>, transform_indices = @transform_7, window_bounds = array<i64: 64, 128>}, {pipeline_mode = #tpu.pipeline_mode<synchronous>, transform_indices = @transform_8, window_bounds = array<i64: 1, 128>}, {transform_indices = @transform_9, window_bounds = array<i64: 2, 128>}]} {
    %c0_i32 = arith.constant 0 : i32
    %0 = arith.cmpi eq, %arg1, %c0_i32 : i32
    %1 = arith.extui %0 : i1 to i32
    %c0_i32_0 = arith.constant 0 : i32
    %2 = arith.cmpi ne, %1, %c0_i32_0 : i32
    scf.if %2 {
      %cst_15 = arith.constant 0xFF800000 : f32
      %21 = vector.broadcast %cst_15 : f32 to vector<2x512xf32>
      %c0_16 = arith.constant 0 : index
      %c0_17 = arith.constant 0 : index
      %22 = vector.load %arg12[%c0_16, %c0_17] : memref<2x512xf32, #tpu.memory_space<vmem>>, vector<2x512xf32>
      tpu.vector_store %arg12[%c0_16, %c0_17], %21 {strides = array<i32>} : memref<2x512xf32, #tpu.memory_space<vmem>>, vector<2x512xf32>,
    } else {
    }
    %c0 = arith.constant 0 : index
    %c0_1 = arith.constant 0 : index
    %c0_2 = arith.constant 0 : index
    %3 = vector.load %arg2[%c0, %c0_1, %c0_2] : memref<2x16x384xbf16, #tpu.memory_space<vmem>>, vector<2x16x384xbf16>
    %4 = vector.shape_cast %3 : vector<2x16x384xbf16> to vector<32x384xbf16>
    %c0_3 = arith.constant 0 : index
    %c0_4 = arith.constant 0 : index
    %5 = vector.load %arg3[%c0_3, %c0_4] : memref<384x512xbf16, #tpu.memory_space<vmem>>, vector<384x512xbf16>
    %cst = arith.constant dense<0.000000e+00> : vector<32x512xf32>
    %6 = tpu.matmul %4, %5, %cst {dimension_numbers = #tpu.dot_dimension_numbers<[1], [0], [0], [1], [0, 0, 1, 1], [], []>} : vector<32x384xbf16>, vector<384x512xbf16>, vector<32x512xf32> -> vector<32x512xf32>
    %c0_5 = arith.constant 0 : index
    %c0_6 = arith.constant 0 : index
    %7 = vector.load %arg4[%c0_5, %c0_6] : memref<1x512xf32, #tpu.memory_space<vmem>>, vector<1x512xf32>
    %8 = vector.broadcast %7 : vector<1x512xf32> to vector<32x512xf32>
    %9 = arith.addf %6, %8 : vector<32x512xf32>
    %cst_7 = arith.constant 2.000000e-01 : f32
    %10 = vector.broadcast %cst_7 : f32 to vector<32x512xf32>
    %11 = arith.mulf %10, %9 : vector<32x512xf32>
    %12 = arith.maximumf %9, %11 : vector<32x512xf32>
    %c0_8 = arith.constant 0 : index
    %c0_9 = arith.constant 0 : index
    %13 = vector.load %arg12[%c0_8, %c0_9] : memref<2x512xf32, #tpu.memory_space<vmem>>, vector<2x512xf32>
    %14 = vector.shape_cast %12 : vector<32x512xf32> to vector<2x16x512xf32>
    %cst_10 = arith.constant dense<0xFF800000> : vector<2x512xf32>
    %15 = vector.multi_reduction <maximumf>, %14, %cst_10 [1] : vector<2x16x512xf32> to vector<2x512xf32>
    %16 = arith.maximumf %13, %15 : vector<2x512xf32>
    %c0_11 = arith.constant 0 : index
    %c0_12 = arith.constant 0 : index
    %17 = vector.load %arg12[%c0_11, %c0_12] : memref<2x512xf32, #tpu.memory_space<vmem>>, vector<2x512xf32>
    tpu.vector_store %arg12[%c0_11, %c0_12], %16 {strides = array<i32>} : memref<2x512xf32, #tpu.memory_space<vmem>>, vector<2x512xf32>,
    %c0_i32_13 = arith.constant 0 : i32
    %18 = arith.cmpi eq, %arg1, %c0_i32_13 : i32
    %19 = arith.extui %18 : i1 to i32
    %c0_i32_14 = arith.constant 0 : i32
    %20 = arith.cmpi ne, %19, %c0_i32_14 : i32
    scf.if %20 {
      %c0_15 = arith.constant 0 : index
      %c0_16 = arith.constant 0 : index
      %21 = vector.load %arg12[%c0_15, %c0_16] : memref<2x512xf32, #tpu.memory_space<vmem>>, vector<2x512xf32>
      %22 = arith.truncf %21 : vector<2x512xf32> to vector<2x512xbf16>
      %c0_17 = arith.constant 0 : index
      %c0_18 = arith.constant 0 : index
      %23 = vector.load %arg5[%c0_17, %c0_18] : memref<512x256xbf16, #tpu.memory_space<vmem>>, vector<512x256xbf16>
      %cst_19 = arith.constant dense<0.000000e+00> : vector<2x256xf32>
      %24 = tpu.matmul %22, %23, %cst_19 {dimension_numbers = #tpu.dot_dimension_numbers<[1], [0], [0], [1], [0, 0, 1, 1], [], []>} : vector<2x512xbf16>, vector<512x256xbf16>, vector<2x256xf32> -> vector<2x256xf32>
      %c0_20 = arith.constant 0 : index
      %c0_21 = arith.constant 0 : index
      %25 = vector.load %arg6[%c0_20, %c0_21] : memref<1x256xf32, #tpu.memory_space<vmem>>, vector<1x256xf32>
      %26 = vector.broadcast %25 : vector<1x256xf32> to vector<2x256xf32>
      %27 = arith.addf %24, %26 : vector<2x256xf32>
      %cst_22 = arith.constant 0.000000e+00 : f32
      %28 = vector.broadcast %cst_22 : f32 to vector<2x256xf32>
      %29 = arith.maximumf %27, %28 : vector<2x256xf32>
      %c0_23 = arith.constant 0 : index
      %c0_24 = arith.constant 0 : index
      %30 = vector.load %arg7[%c0_23, %c0_24] : memref<256x64xf32, #tpu.memory_space<vmem>>, vector<256x64xf32>
      %cst_25 = arith.constant dense<0.000000e+00> : vector<2x64xf32>
      %31 = tpu.matmul %29, %30, %cst_25 {dimension_numbers = #tpu.dot_dimension_numbers<[1], [0], [0], [1], [0, 0, 1, 1], [], []>} : vector<2x256xf32>, vector<256x64xf32>, vector<2x64xf32> -> vector<2x64xf32>
      %c0_26 = arith.constant 0 : index
      %c0_27 = arith.constant 0 : index
      %32 = vector.load %arg8[%c0_26, %c0_27] : memref<1x64xf32, #tpu.memory_space<vmem>>, vector<1x64xf32>
      %33 = vector.broadcast %32 : vector<1x64xf32> to vector<2x64xf32>
      %34 = arith.addf %31, %33 : vector<2x64xf32>
      %cst_28 = arith.constant 0.000000e+00 : f32
      %35 = vector.broadcast %cst_28 : f32 to vector<2x64xf32>
      %36 = arith.maximumf %34, %35 : vector<2x64xf32>
      %c0_29 = arith.constant 0 : index
      %c0_30 = arith.constant 0 : index
      %37 = vector.load %arg9[%c0_29, %c0_30] : memref<64x128xf32, #tpu.memory_space<vmem>>, vector<64x128xf32>
      %cst_31 = arith.constant dense<0.000000e+00> : vector<2x128xf32>
      %38 = tpu.matmul %36, %37, %cst_31 {dimension_numbers = #tpu.dot_dimension_numbers<[1], [0], [0], [1], [0, 0, 1, 1], [], []>} : vector<2x64xf32>, vector<64x128xf32>, vector<2x128xf32> -> vector<2x128xf32>
      %c0_32 = arith.constant 0 : index
      %c0_33 = arith.constant 0 : index
      %39 = vector.load %arg10[%c0_32, %c0_33] : memref<1x128xf32, #tpu.memory_space<vmem>>, vector<1x128xf32>
      %40 = vector.broadcast %39 : vector<1x128xf32> to vector<2x128xf32>
      %41 = arith.addf %38, %40 : vector<2x128xf32>
      %42 = math.tanh %41 : vector<2x128xf32>
      %c0_34 = arith.constant 0 : index
      %c0_35 = arith.constant 0 : index
      %43 = vector.load %arg11[%c0_34, %c0_35] : memref<2x128xf32, #tpu.memory_space<vmem>>, vector<2x128xf32>
      tpu.vector_store %arg11[%c0_34, %c0_35], %42 {strides = array<i32>} : memref<2x128xf32, #tpu.memory_space<vmem>>, vector<2x128xf32>,
    } else {
    }
    return
  }
  func.func @transform_0(%arg0: i32, %arg1: i32) -> (i32, i32, i32) {
    %c0_i32 = arith.constant 0 : i32
    %c0_i32_0 = arith.constant 0 : i32
    return %arg0, %arg1, %c0_i32 : i32, i32, i32
  }
  func.func @transform_1(%arg0: i32, %arg1: i32) -> (i32, i32) {
    %c0_i32 = arith.constant 0 : i32
    %c0_i32_0 = arith.constant 0 : i32
    %c0_i32_1 = arith.constant 0 : i32
    return %c0_i32, %c0_i32_0 : i32, i32
  }
  func.func @transform_2(%arg0: i32, %arg1: i32) -> (i32, i32) {
    %c0_i32 = arith.constant 0 : i32
    %c0_i32_0 = arith.constant 0 : i32
    %c0_i32_1 = arith.constant 0 : i32
    return %c0_i32, %c0_i32_0 : i32, i32
  }
  func.func @transform_3(%arg0: i32, %arg1: i32) -> (i32, i32) {
    %c0_i32 = arith.constant 0 : i32
    %c0_i32_0 = arith.constant 0 : i32
    %c0_i32_1 = arith.constant 0 : i32
    return %c0_i32, %c0_i32_0 : i32, i32
  }
  func.func @transform_4(%arg0: i32, %arg1: i32) -> (i32, i32) {
    %c0_i32 = arith.constant 0 : i32
    %c0_i32_0 = arith.constant 0 : i32
    %c0_i32_1 = arith.constant 0 : i32
    return %c0_i32, %c0_i32_0 : i32, i32
  }
  func.func @transform_5(%arg0: i32, %arg1: i32) -> (i32, i32) {
    %c0_i32 = arith.constant 0 : i32
    %c0_i32_0 = arith.constant 0 : i32
    %c0_i32_1 = arith.constant 0 : i32
    return %c0_i32, %c0_i32_0 : i32, i32
  }
  func.func @transform_6(%arg0: i32, %arg1: i32) -> (i32, i32) {
    %c0_i32 = arith.constant 0 : i32
    %c0_i32_0 = arith.constant 0 : i32
    %c0_i32_1 = arith.constant 0 : i32
    return %c0_i32, %c0_i32_0 : i32, i32
  }
  func.func @transform_7(%arg0: i32, %arg1: i32) -> (i32, i32) {
    %c0_i32 = arith.constant 0 : i32
    %c0_i32_0 = arith.constant 0 : i32
    %c0_i32_1 = arith.constant 0 : i32
    return %c0_i32, %c0_i32_0 : i32, i32
  }
  func.func @transform_8(%arg0: i32, %arg1: i32) -> (i32, i32) {
    %c0_i32 = arith.constant 0 : i32
    %c0_i32_0 = arith.constant 0 : i32
    %c0_i32_1 = arith.constant 0 : i32
    return %c0_i32, %c0_i32_0 : i32, i32
  }
  func.func @transform_9(%arg0: i32, %arg1: i32) -> (i32, i32) {
    %c0_i32 = arith.constant 0 : i32
    %c0_i32_0 = arith.constant 0 : i32
    return %arg0, %c0_i32 : i32, i32
  }
}

</mosaic_0001>

<bundles_post_ra>
// kernel: mlp_forward.1
= control target key start
LH: loop header
LB: loop body
LE: loop exit
PB: predicated region body
PF: predicated region fallthrough
CT: control target
= control target key end

     0   :  { %14 = vsyncpa [#allocation4], 0  ;;  %s2961_s0 = inlined_call_operand.hbm [shape: bf16[2,16,384], index: 0, kind: input, shape index: {}]   ;;  %s2962_s1 = inlined_call_operand.hbm [shape: bf16[384,512], index: 1, kind: input, shape index: {}]   ;;  %s2963_s2 = inlined_call_operand.hbm [shape: f32[1,512], index: 2, kind: input, shape index: {}]   ;;  %s2964_s3 = inlined_call_operand.hbm [shape: bf16[512,256], index: 3, kind: input, shape index: {}]   ;;  %s2965_s4 = inlined_call_operand.hbm [shape: f32[1,256], index: 4, kind: input, shape index: {}]   ;;  %s2966_s5 = inlined_call_operand.hbm [shape: f32[256,64], index: 5, kind: input, shape index: {}]   ;;  %s2967_s6 = inlined_call_operand.hbm [shape: f32[1,64], index: 6, kind: input, shape index: {}]   ;;  %s2968_s7 = inlined_call_operand.hbm [shape: f32[64,128], index: 7, kind: input, shape index: {}]   ;;  %s2969_s8 = inlined_call_operand.hbm [shape: f32[1,128], index: 8, kind: input, shape index: {}]   ;;  %s2970_s9 = inlined_call_operand.hbm [shape: f32[2,128], index: 9, kind: output, shape index: {}]  }
   0x1   :  { %15 = vsyncpa [#allocation7], 0 }
   0x2   :  { %16 = vsyncpa [#allocation10], 0 }
   0x3   :  { %17 = vsyncpa [#allocation13], 0 }
   0x4   :  { %18 = vsyncpa [#allocation16], 0 }
   0x5   :  { %19 = vsyncpa [#allocation5], 0  ;;  %s2697_s30 = smov [#allocation6]   ;;  %s2465_s13 = scalar_lea.hbm %s2962_s1, 12288 }
   0x6   :  { %s37_s10 = sshll.u32 %s2697_s30, 4  ;;  %p2466_p0 = scmp.ne.s32.totalorder %s2962_s1, %s2465_s13  ;;  %s38_s10 = int_to_ptr.vmem [resolvable:$true] %s37_s10 }
   0x7   :  { %p2469_p1 = scmp.lt.u32.totalorder %s2465_s13, %s2962_s1 }
   0x9   :  { %p2471_p2 = pnand %p2469_p1, %p2466_p0 }
   0xb   :  { %2474 = shalt.err (!%p2471_p2)
}
   0xc   :  { %s2475_s18 = scalar_lea.vmem %s38_s10, 12288  ;;  %p2480_p4 = scmp.lt.s32.totalorder %s38_s10, %s38_s10 }
   0xd   :  { %p2476_p3 = scmp.ne.s32.totalorder %s38_s10, %s2475_s18  ;;  %p2481_p5 = scmp.lt.s32.totalorder %s2475_s18, %s2475_s18 }
   0xf   :  { %p2482_p6 = por %p2481_p5, %p2480_p4 }
  0x11   :  { %p2483_p7 = pnand %p2482_p6, %p2476_p3 }
  0x13   :  { %2486 = shalt.err (!%p2483_p7)
}
  0x14   :  { %s2698_s19 = smov 256   ;;  %s2699_s20 = smov 16  }
  0x15   :  { %43 = dma.hbm_to_vmem [thread:$0]  %s2962_s1, 12288, %s38_s10, [#allocation7], %s2698_s19, %s2698_s19, %s2699_s20  }
  0x16   :  { %s2700_s23 = smov [#allocation9]   ;;  %s2487_s27 = scalar_lea.hbm %s2964_s3, 8192 }
  0x17   :  { %s59_s24 = sshll.u32 %s2700_s23, 4  ;;  %p2488_p8 = scmp.ne.s32.totalorder %s2964_s3, %s2487_s27  ;;  %s60_s24 = int_to_ptr.vmem [resolvable:$true] %s59_s24 }
  0x18   :  { %p2491_p9 = scmp.lt.u32.totalorder %s2487_s27, %s2964_s3 }
  0x1a   :  { %p2493_p10 = pnand %p2491_p9, %p2488_p8 }
  0x1c   :  { %2496 = shalt.err (!%p2493_p10)
}
  0x1d   :  { %s2497_s12 = scalar_lea.vmem %s60_s24, 8192  ;;  %p2502_p12 = scmp.lt.s32.totalorder %s60_s24, %s60_s24 }
  0x1e   :  { %p2498_p11 = scmp.ne.s32.totalorder %s60_s24, %s2497_s12  ;;  %p2503_p13 = scmp.lt.s32.totalorder %s2497_s12, %s2497_s12 }
  0x20   :  { %p2504_p0 = por %p2503_p13, %p2502_p12 }
  0x22   :  { %p2505_p1 = pnand %p2504_p0, %p2498_p11 }
  0x24   :  { %2508 = shalt.err (!%p2505_p1)
}
  0x25   :  { %s2701_s1 = smov 128   ;;  %s2702_s10 = smov 8  }
  0x26   :  { %65 = dma.hbm_to_vmem [thread:$0]  %s2964_s3, 8192, %s60_s24, [#allocation10], %s2701_s1, %s2701_s1, %s2702_s10  }
  0x27   :  { %s2703_s15 = smov [#allocation12]   ;;  %s2704_s17 = smov [#allocation15]  }
  0x28   :  { %s81_s16 = sshll.u32 %s2703_s15, 4  ;;  %s103_s18 = sshll.u32 %s2704_s17, 4  ;;  %s82_s16 = int_to_ptr.vmem [resolvable:$true] %s81_s16  ;;  %s2795_s18 = int_to_ptr.vmem [resolvable:$true] %s103_s18 }
  0x29   :  { %s2509_s21 = scalar_lea.hbm %s2966_s5, 4096 }
  0x2a   :  { %p2510_p2 = scmp.ne.s32.totalorder %s2966_s5, %s2509_s21  ;;  %p2513_p3 = scmp.lt.u32.totalorder %s2509_s21, %s2966_s5 }
  0x2c   :  { %p2515_p4 = pnand %p2513_p3, %p2510_p2 }
  0x2e   :  { %2518 = shalt.err (!%p2515_p4)
}
  0x2f   :  { %s2519_s3 = scalar_lea.vmem %s82_s16, 4096  ;;  %p2524_p6 = scmp.lt.s32.totalorder %s82_s16, %s82_s16 }
  0x30   :  { %p2520_p5 = scmp.ne.s32.totalorder %s82_s16, %s2519_s3  ;;  %p2525_p7 = scmp.lt.s32.totalorder %s2519_s3, %s2519_s3 }
  0x32   :  { %p2526_p8 = por %p2525_p7, %p2524_p6 }
  0x34   :  { %p2527_p9 = pnand %p2526_p8, %p2520_p5 }
  0x36   :  { %2530 = shalt.err (!%p2527_p9)
}
  0x37   :  { %87 = dma.hbm_to_vmem [thread:$0]  %s2966_s5, 4096, %s82_s16, [#allocation13], %s2701_s1, %s2701_s1, %s2702_s10  }
  0x38   :  { %s2531_s30 = scalar_lea.hbm %s2968_s7, 1024 }
  0x39   :  { %p2532_p10 = scmp.ne.s32.totalorder %s2968_s7, %s2531_s30  ;;  %p2535_p11 = scmp.lt.u32.totalorder %s2531_s30, %s2968_s7 }
  0x3b   :  { %p2537_p12 = pnand %p2535_p11, %p2532_p10 }
  0x3d   :  { %2540 = shalt.err (!%p2537_p12)
}
  0x3e   :  { %s2541_s15 = scalar_lea.vmem %s2795_s18, 1024  ;;  %p2546_p0 = scmp.lt.s32.totalorder %s2795_s18, %s2795_s18 }
  0x3f   :  { %p2542_p13 = scmp.ne.s32.totalorder %s2795_s18, %s2541_s15  ;;  %p2547_p1 = scmp.lt.s32.totalorder %s2541_s15, %s2541_s15 }
  0x41   :  { %p2548_p2 = por %p2547_p1, %p2546_p0 }
  0x43   :  { %p2549_p3 = pnand %p2548_p2, %p2542_p13 }
  0x45   :  { %2552 = shalt.err (!%p2549_p3)
}
  0x46   :  { %109 = dma.hbm_to_vmem [thread:$0]  %s2968_s7, 1024, %s2795_s18, [#allocation16], %s2701_s1, %s2701_s1, %s2702_s10  }
  0x47   :  { %s2705_s17 = smov [#allocation3]   ;;  %s2553_s22 = scalar_lea.hbm %s2961_s0, 768 }
  0x48   :  { %s25_s19 = sshll.u32 %s2705_s17, 4  ;;  %p2554_p4 = scmp.ne.s32.totalorder %s2961_s0, %s2553_s22  ;;  %s26_s19 = int_to_ptr.vmem [resolvable:$true] %s25_s19 }
  0x49   :  { %p2557_p5 = scmp.lt.u32.totalorder %s2553_s22, %s2961_s0 }
  0x4b   :  { %p2559_p6 = pnand %p2557_p5, %p2554_p4 }
  0x4d   :  { %2562 = shalt.err (!%p2559_p6)
}
  0x4e   :  { %s2563_s24 = scalar_lea.vmem %s26_s19, 768  ;;  %p2568_p8 = scmp.lt.s32.totalorder %s26_s19, %s26_s19 }
  0x4f   :  { %p2564_p7 = scmp.ne.s32.totalorder %s26_s19, %s2563_s24  ;;  %p2569_p9 = scmp.lt.s32.totalorder %s2563_s24, %s2563_s24 }
  0x51   :  { %p2570_p10 = por %p2569_p9, %p2568_p8 }
  0x53   :  { %p2571_p11 = pnand %p2570_p10, %p2564_p7 }
  0x55   :  { %2574 = shalt.err (!%p2571_p11)
}
  0x56   :  { %s2706_s7 = smov 192   ;;  %s2707_s1 = smov 12  }
  0x57   :  { %31 = dma.hbm_to_vmem [thread:$0]  %s2961_s0, 768, %s26_s19, [#allocation4], %s2706_s7, %s2706_s7, %s2707_s1  }
  0x58   :  { %s2708_s27 = smov [#allocation8]   ;;  %s2709_s29 = smov [#allocation11]  }
  0x59   :  { %s50_s28 = sshll.u32 %s2708_s27, 4  ;;  %s72_s30 = sshll.u32 %s2709_s29, 4  ;;  %s51_s28 = int_to_ptr.vmem [resolvable:$true] %s50_s28  ;;  %s73_s30 = int_to_ptr.vmem [resolvable:$true] %s72_s30 }
  0x5a   :  { %s2575_s13 = scalar_lea.hbm %s2963_s2, 64 }
  0x5b   :  { %p2576_p12 = scmp.ne.s32.totalorder %s2963_s2, %s2575_s13  ;;  %p2579_p13 = scmp.lt.u32.totalorder %s2575_s13, %s2963_s2 }
  0x5d   :  { %p2581_p0 = pnand %p2579_p13, %p2576_p12 }
  0x5f   :  { %2584 = shalt.err (!%p2581_p0)
}
  0x60   :  { %s2585_s0 = scalar_lea.vmem %s51_s28, 64  ;;  %p2590_p2 = scmp.lt.s32.totalorder %s51_s28, %s51_s28 }
  0x61   :  { %p2586_p1 = scmp.ne.s32.totalorder %s51_s28, %s2585_s0  ;;  %p2591_p3 = scmp.lt.s32.totalorder %s2585_s0, %s2585_s0 }
  0x63   :  { %p2592_p4 = por %p2591_p3, %p2590_p2 }
  0x65   :  { %p2593_p5 = pnand %p2592_p4, %p2586_p1 }
  0x67   :  { %2596 = shalt.err (!%p2593_p5)
}
  0x68   :  { %53 = dma.hbm_to_vmem [thread:$0]  %s2963_s2, 64, %s51_s28, [#allocation7]  }
  0x69   :  { %s2597_s22 = scalar_lea.hbm %s2965_s4, 32 }
  0x6a   :  { %p2598_p6 = scmp.ne.s32.totalorder %s2965_s4, %s2597_s22  ;;  %p2601_p7 = scmp.lt.u32.totalorder %s2597_s22, %s2965_s4 }
  0x6c   :  { %p2603_p8 = pnand %p2601_p7, %p2598_p6 }
  0x6e   :  { %2606 = shalt.err (!%p2603_p8)
}
  0x6f   :  { %s2607_s24 = scalar_lea.vmem %s73_s30, 32  ;;  %p2612_p10 = scmp.lt.s32.totalorder %s73_s30, %s73_s30 }
  0x70   :  { %p2608_p9 = scmp.ne.s32.totalorder %s73_s30, %s2607_s24  ;;  %p2613_p11 = scmp.lt.s32.totalorder %s2607_s24, %s2607_s24 }
  0x72   :  { %p2614_p12 = por %p2613_p11, %p2612_p10 }
  0x74   :  { %p2615_p13 = pnand %p2614_p12, %p2608_p9 }
  0x76   :  { %2618 = shalt.err (!%p2615_p13)
}
  0x77   :  { %75 = dma.hbm_to_vmem [thread:$0]  %s2965_s4, 32, %s73_s30, [#allocation10]  }
  0x78   :  { %s2710_s1 = smov [#allocation14]   ;;  %s2711_s18 = smov [#allocation17]  }
  0x79   :  { %s94_s10 = sshll.u32 %s2710_s1, 4  ;;  %s116_s27 = sshll.u32 %s2711_s18, 4  ;;  %s95_s10 = int_to_ptr.vmem [resolvable:$true] %s94_s10  ;;  %s117_s27 = int_to_ptr.vmem [resolvable:$true] %s116_s27 }
  0x7a   :  { %s2619_s11 = scalar_lea.hbm %s2967_s6, 16 }
  0x7b   :  { %p2620_p0 = scmp.ne.s32.totalorder %s2967_s6, %s2619_s11  ;;  %p2623_p1 = scmp.lt.u32.totalorder %s2619_s11, %s2967_s6 }
  0x7d   :  { %p2625_p2 = pnand %p2623_p1, %p2620_p0 }
  0x7f   :  { %2628 = shalt.err (!%p2625_p2)
}
  0x80   :  { %s2629_s4 = scalar_lea.vmem %s95_s10, 16  ;;  %s2633_s30 = scalar_lea.vmem %s95_s10, 32 }
  0x81   :  { %p2630_p3 = scmp.ne.s32.totalorder %s95_s10, %s2629_s4  ;;  %p2634_p4 = scmp.lt.s32.totalorder %s95_s10, %s95_s10 }
  0x82   :  { %p2635_p5 = scmp.lt.s32.totalorder %s2633_s30, %s2629_s4 }
  0x84   :  { %p2636_p6 = por %p2635_p5, %p2634_p4 }
  0x86   :  { %p2637_p7 = pnand %p2636_p6, %p2630_p3 }
  0x88   :  { %2640 = shalt.err (!%p2637_p7)
}
  0x89   :  { %97 = dma.hbm_to_vmem [thread:$0]  %s2967_s6, 16, %s95_s10, [#allocation13]  }
  0x8a   :  { %s2641_s19 = scalar_lea.hbm %s2969_s8, 16 }
  0x8b   :  { %p2642_p8 = scmp.ne.s32.totalorder %s2969_s8, %s2641_s19  ;;  %p2645_p9 = scmp.lt.u32.totalorder %s2641_s19, %s2969_s8 }
  0x8d   :  { %p2647_p10 = pnand %p2645_p9, %p2642_p8 }
  0x8f   :  { %2650 = shalt.err (!%p2647_p10)
}
  0x90   :  { %s2651_s25 = scalar_lea.vmem %s117_s27, 16  ;;  %s2655_s26 = scalar_lea.vmem %s117_s27, 32 }
  0x91   :  { %p2652_p11 = scmp.ne.s32.totalorder %s117_s27, %s2651_s25  ;;  %p2656_p12 = scmp.lt.s32.totalorder %s117_s27, %s117_s27 }
  0x92   :  { %p2657_p13 = scmp.lt.s32.totalorder %s2655_s26, %s2651_s25 }
  0x94   :  { %p2658_p0 = por %p2657_p13, %p2656_p12 }
  0x96   :  { %p2659_p1 = pnand %p2658_p0, %p2652_p11 }
  0x98   :  { %2662 = shalt.err (!%p2659_p1)
}
  0x99   :  { %119 = dma.hbm_to_vmem [thread:$0]  %s2969_s8, 16, %s117_s27, [#allocation16]  }
  0x9a   :  { %2685 = dma.done.wait [#allocation4], 768  }
  0x9b   :  { %2686 = vsyncadd [#allocation4], 4294966528 }
  0x9c   :  { %2687 = dma.done.wait [#allocation7], 12352  }
  0x9d   :  { %2688 = vsyncadd [#allocation7], 4294954944 }
  0x9e   :  { %2689 = dma.done.wait [#allocation10], 8224  }
  0x9f   :  { %2690 = vsyncadd [#allocation10], 4294959072 }
  0xa0   :  { %2691 = dma.done.wait [#allocation13], 4112  }
  0xa1   :  { %2692 = vsyncadd [#allocation13], 4294963184 }
  0xa2   :  { %2693 = dma.done.wait [#allocation16], 1040  }
  0xa3   :  { %2694 = vsyncadd [#allocation16], 4294966256  ;;  %v2712_v0 = vmov 0   ;;  %v2215_v1 = vld [vmem:[#allocation6 + $0x4] ss:$16 sps:$4 sm:$0xff]   ;;  %vm1139_vm0 = vcmask 1041409  }
  0xa4   :  { %876 = vmatprep.mubr.bf16.mxu1 %v2712_v0  ;;  %v2217_v2 = vld [vmem:[#allocation6 + $0x204] ss:$16 sps:$4 sm:$0xff]   ;;  %791 = vmatprep.subr.bf16.mxu0 %v2215_v1  ;;  %v2219_v3 = vld [vmem:[#allocation6] ss:$16 sps:$4 sm:$0xff]   ;;  %v2268_v34 = vld [vmem:[#allocation6 + $0xc] ss:$16 sps:$4 sm:$0xff]  }
  0xa5   :  { %v2220_v4 = vld [vmem:[#allocation6 + $0x200] ss:$16 sps:$4 sm:$0xff]   ;;  %844 = vmatprep.subr.bf16.mxu1 %v2217_v2  ;;  %v2221_v5 = vld [vmem:[#allocation6 + $0x24] ss:$16 sps:$4 sm:$0xff]   ;;  %792 = vmatpush1.bf16.msra.mxu0 %v2219_v3  ;;  %v2266_v36 = vld [vmem:[#allocation6 + $0x8] ss:$16 sps:$4 sm:$0xff]  }
  0xa6   :  { %845 = vmatpush1.bf16.msra.mxu1 %v2220_v4  ;;  %v2223_v6 = vld [vmem:[#allocation6 + $0x224] ss:$16 sps:$4 sm:$0xff]   ;;  %v2225_v7 = vld [vmem:[#allocation6 + $0x20] ss:$16 sps:$4 sm:$0xff]   ;;  %793 = vmatprep.subr.bf16.mxu0 %v2221_v5  ;;  %v2274_v39 = vld [vmem:[#allocation6 + $0x2c] ss:$16 sps:$4 sm:$0xff]  }
  0xa7   :  { %v2226_v8 = vld [vmem:[#allocation6 + $0x220] ss:$16 sps:$4 sm:$0xff]   ;;  %846 = vmatprep.subr.bf16.mxu1 %v2223_v6  ;;  %v2227_v9 = vld [vmem:[#allocation6 + $0x44] ss:$16 sps:$4 sm:$0xff]   ;;  %v2272_v40 = vld [vmem:[#allocation6 + $0x28] ss:$16 sps:$4 sm:$0xff]  }
  0xa8   :  { %v2229_v10 = vld [vmem:[#allocation6 + $0x244] ss:$16 sps:$4 sm:$0xff]   ;;  %v2231_v11 = vld [vmem:[#allocation6 + $0x40] ss:$16 sps:$4 sm:$0xff]   ;;  %v2280_v43 = vld [vmem:[#allocation6 + $0x4c] ss:$16 sps:$4 sm:$0xff]  }
  0xa9   :  { %v2232_v12 = vld [vmem:[#allocation6 + $0x240] ss:$16 sps:$4 sm:$0xff]   ;;  %794 = vmatpush1.bf16.msra.mxu0 %v2225_v7  ;;  %v2233_v13 = vld [vmem:[#allocation6 + $0x64] ss:$16 sps:$4 sm:$0xff]   ;;  %v2278_v44 = vld [vmem:[#allocation6 + $0x48] ss:$16 sps:$4 sm:$0xff]  }
  0xaa   :  { %847 = vmatpush1.bf16.msra.mxu1 %v2226_v8  ;;  %795 = vmatprep.subr.bf16.mxu0 %v2227_v9  ;;  %v2235_v14 = vld [vmem:[#allocation6 + $0x264] ss:$16 sps:$4 sm:$0xff]   ;;  %v2237_v15 = vld [vmem:[#allocation6 + $0x60] ss:$16 sps:$4 sm:$0xff]   ;;  %v2286_v47 = vld [vmem:[#allocation6 + $0x6c] ss:$16 sps:$4 sm:$0xff]  }
  0xab   :  { %848 = vmatprep.subr.bf16.mxu1 %v2229_v10  ;;  %v2238_v16 = vld [vmem:[#allocation6 + $0x260] ss:$16 sps:$4 sm:$0xff]   ;;  %v2239_v17 = vld [vmem:[#allocation6 + $0x84] ss:$16 sps:$4 sm:$0xff]   ;;  %v2284_v48 = vld [vmem:[#allocation6 + $0x68] ss:$16 sps:$4 sm:$0xff]  }
  0xac   :  { %v2241_v18 = vld [vmem:[#allocation6 + $0x284] ss:$16 sps:$4 sm:$0xff]   ;;  %v2243_v19 = vld [vmem:[#allocation6 + $0x80] ss:$16 sps:$4 sm:$0xff]   ;;  %v2292_v52 = vld [vmem:[#allocation6 + $0x8c] ss:$16 sps:$4 sm:$0xff]  }
  0xad   :  { %796 = vmatpush1.bf16.msra.mxu0 %v2231_v11  ;;  %v2244_v20 = vld [vmem:[#allocation6 + $0x280] ss:$16 sps:$4 sm:$0xff]   ;;  %v2245_v21 = vld [vmem:[#allocation6 + $0xa4] ss:$16 sps:$4 sm:$0xff]   ;;  %v2290_v53 = vld [vmem:[#allocation6 + $0x88] ss:$16 sps:$4 sm:$0xff]  }
  0xae   :  { %849 = vmatpush1.bf16.msra.mxu1 %v2232_v12  ;;  %797 = vmatprep.subr.bf16.mxu0 %v2233_v13  ;;  %v2247_v22 = vld [vmem:[#allocation6 + $0x2a4] ss:$16 sps:$4 sm:$0xff]   ;;  %v2249_v23 = vld [vmem:[#allocation6 + $0xa0] ss:$16 sps:$4 sm:$0xff]   ;;  %v2298_v56 = vld [vmem:[#allocation6 + $0xac] ss:$16 sps:$4 sm:$0xff]  }
  0xaf   :  { %850 = vmatprep.subr.bf16.mxu1 %v2235_v14  ;;  %v2250_v24 = vld [vmem:[#allocation6 + $0x2a0] ss:$16 sps:$4 sm:$0xff]   ;;  %v2251_v25 = vld [vmem:[#allocation6 + $0xc4] ss:$16 sps:$4 sm:$0xff]   ;;  %v2296_v57 = vld [vmem:[#allocation6 + $0xa8] ss:$16 sps:$4 sm:$0xff]  }
  0xb0   :  { %v2253_v26 = vld [vmem:[#allocation6 + $0x2c4] ss:$16 sps:$4 sm:$0xff]   ;;  %v2255_v27 = vld [vmem:[#allocation6 + $0xc0] ss:$16 sps:$4 sm:$0xff]   ;;  %v2304_v61 = vld [vmem:[#allocation6 + $0xcc] ss:$16 sps:$4 sm:$0xff]  }
  0xb1   :  { %798 = vmatpush1.bf16.msra.mxu0 %v2237_v15  ;;  %v2256_v28 = vld [vmem:[#allocation6 + $0x2c0] ss:$16 sps:$4 sm:$0xff]   ;;  %v2257_v29 = vld [vmem:[#allocation6 + $0xe4] ss:$16 sps:$4 sm:$0xff]   ;;  %v2302_v62 = vld [vmem:[#allocation6 + $0xc8] ss:$16 sps:$4 sm:$0xff]  }
  0xb2   :  { %851 = vmatpush1.bf16.msra.mxu1 %v2238_v16  ;;  %799 = vmatprep.subr.bf16.mxu0 %v2239_v17  ;;  %v2259_v30 = vld [vmem:[#allocation6 + $0x2e4] ss:$16 sps:$4 sm:$0xff]   ;;  %v2261_v31 = vld [vmem:[#allocation6 + $0xe0] ss:$16 sps:$4 sm:$0xff]   ;;  %v2310_v2 = vld [vmem:[#allocation6 + $0xec] ss:$16 sps:$4 sm:$0xff]  }
  0xb3   :  { %852 = vmatprep.subr.bf16.mxu1 %v2241_v18  ;;  %v2262_v32 = vld [vmem:[#allocation6 + $0x2e0] ss:$16 sps:$4 sm:$0xff]   ;;  %v2263_v33 = vld [vmem:[#allocation6 + $0x104] ss:$16 sps:$4 sm:$0xff]   ;;  %v2308_v3 = vld [vmem:[#allocation6 + $0xe8] ss:$16 sps:$4 sm:$0xff]  }
  0xb4   :  { %v2893_v35 = vld [vmem:[#allocation3 + $0x8] ss:$12 sps:$4 sm:$0xff]   ;;  %v2269_v37 = vld [vmem:[#allocation6 + $0x100] ss:$16 sps:$4 sm:$0xff]   ;;  %v2317_v5 = vld [vmem:[#allocation6 + $0x10c] ss:$16 sps:$4 sm:$0xff]  }
  0xb5   :  { %800 = vmatpush1.bf16.msra.mxu0 %v2243_v19  ;;  %v2270_v38 = vld [vmem:[#allocation6 + $0x124] ss:$16 sps:$4 sm:$0xff]   ;;  %v2275_v41 = vld [vmem:[#allocation6 + $0x120] ss:$16 sps:$4 sm:$0xff]   ;;  %v2315_v7 = vld [vmem:[#allocation6 + $0x108] ss:$16 sps:$4 sm:$0xff]  }
  0xb6   :  { %853 = vmatpush1.bf16.msra.mxu1 %v2244_v20  ;;  %801 = vmatprep.subr.bf16.mxu0 %v2245_v21  ;;  %v2276_v42 = vld [vmem:[#allocation6 + $0x144] ss:$16 sps:$4 sm:$0xff]   ;;  %v2281_v45 = vld [vmem:[#allocation6 + $0x140] ss:$16 sps:$4 sm:$0xff]   ;;  %v2324_v8 = vld [vmem:[#allocation3 + $0x1c] ss:$12 sps:$4 sm:$0xff]  }
  0xb7   :  { %854 = vmatprep.subr.bf16.mxu1 %v2247_v22  ;;  %v2282_v46 = vld [vmem:[#allocation6 + $0x164] ss:$16 sps:$4 sm:$0xff]   ;;  %v2287_v49 = vld [vmem:[#allocation6 + $0x160] ss:$16 sps:$4 sm:$0xff]   ;;  %v2320_v9 = vld [vmem:[#allocation6 + $0x12c] ss:$16 sps:$4 sm:$0xff]  }
  0xb8   :  { %v2288_v50 = vld [vmem:[#allocation6 + $0x184] ss:$16 sps:$4 sm:$0xff]   ;;  %v2293_v54 = vld [vmem:[#allocation6 + $0x180] ss:$16 sps:$4 sm:$0xff]   ;;  %v2318_v10 = vld [vmem:[#allocation6 + $0x128] ss:$16 sps:$4 sm:$0xff]  }
  0xb9   :  { %802 = vmatpush1.bf16.msra.mxu0 %v2249_v23  ;;  %v2314_v51 = vld [vmem:[#allocation3 + $0x4] ss:$12 sps:$4 sm:$0xff]   ;;  %v2897_v59 = vld [vmem:[#allocation3 + $0x20] ss:$12 sps:$4 sm:$0xff]   ;;  %v2321_v13 = vld [vmem:[#allocation6 + $0x148] ss:$16 sps:$4 sm:$0xff]  }
  0xba   :  { %855 = vmatpush1.bf16.msra.mxu1 %v2250_v24  ;;  %803 = vmatprep.subr.bf16.mxu0 %v2251_v25  ;;  %v2294_v55 = vld [vmem:[#allocation6 + $0x1a4] ss:$16 sps:$4 sm:$0xff]   ;;  %v2299_v58 = vld [vmem:[#allocation6 + $0x1a0] ss:$16 sps:$4 sm:$0xff]   ;;  %v2323_v11 = vld [vmem:[#allocation6 + $0x14c] ss:$16 sps:$4 sm:$0xff]  }
  0xbb   :  { %856 = vmatprep.subr.bf16.mxu1 %v2253_v26  ;;  %823 = vmatprep.mubr.bf16.mxu0 %v2314_v51  ;;  %v2300_v60 = vld [vmem:[#allocation6 + $0x1c4] ss:$16 sps:$4 sm:$0xff]   ;;  %v2305_v63 = vld [vmem:[#allocation6 + $0x1c0] ss:$16 sps:$4 sm:$0xff]   ;;  %v2329_v14 = vld [vmem:[#allocation6 + $0x16c] ss:$16 sps:$4 sm:$0xff]  }
  0xbc   :  { %v2306_v1 = vld [vmem:[#allocation6 + $0x1e4] ss:$16 sps:$4 sm:$0xff]   ;;  %v2311_v4 = vld [vmem:[#allocation6 + $0x1e0] ss:$16 sps:$4 sm:$0xff]   ;;  %v2327_v15 = vld [vmem:[#allocation6 + $0x168] ss:$16 sps:$4 sm:$0xff]  }
  0xbd   :  { %804 = vmatpush1.bf16.msra.mxu0 %v2255_v27  ;;  %v2312_v6 = vld [vmem:[#allocation3] ss:$12 sps:$4 sm:$0xff]   ;;  %v2326_v12 = vld [vmem:[#allocation3 + $0x18] ss:$12 sps:$4 sm:$0xff]   ;;  %vm1141_vm1 = vcmask 1043459   ;;  %vm1143_vm2 = vcmask 1045509  }
  0xbe   :  { %857 = vmatpush1.bf16.msra.mxu1 %v2256_v28  ;;  %805 = vmatprep.subr.bf16.mxu0 %v2257_v29  ;;  %v2333_v16 = vld [vmem:[#allocation6 + $0x18c] ss:$16 sps:$4 sm:$0xff]   ;;  %v2331_v17 = vld [vmem:[#allocation6 + $0x188] ss:$16 sps:$4 sm:$0xff]   ;;  %vm1145_vm3 = vcmask 1047559   ;;  %vm2715_vm4 = vmmov 0  }
  0xbf   :  { %858 = vmatprep.subr.bf16.mxu1 %v2259_v30  ;;  %v2336_v18 = vld [vmem:[#allocation6 + $0x1ac] ss:$16 sps:$4 sm:$0xff]   ;;  %v2334_v19 = vld [vmem:[#allocation6 + $0x1a8] ss:$16 sps:$4 sm:$0xff]   ;;  %vm1785_vm5 = vcmask 523264   ;;  %s2717_s8 = smov [#allocation18]  }
  0xc0   :  { %v2339_v20 = vld [vmem:[#allocation6 + $0x1cc] ss:$16 sps:$4 sm:$0xff]   ;;  %v2337_v21 = vld [vmem:[#allocation6 + $0x1c8] ss:$16 sps:$4 sm:$0xff]   ;;  %s1867_s24 = sshll.u32 %s2717_s8, 4  ;;  %s1868_s24 = int_to_ptr.vmem [resolvable:$true] %s1867_s24 }
  0xc1   :  { %806 = vmatpush1.bf16.msra.mxu0 %v2261_v31  ;;  %v2342_v22 = vld [vmem:[#allocation6 + $0x1ec] ss:$16 sps:$4 sm:$0xff]   ;;  %v2340_v23 = vld [vmem:[#allocation6 + $0x1e8] ss:$16 sps:$4 sm:$0xff]   ;;  %s2663_s2 = scalar_lea.vmem %s1868_s24, 32  ;;  %p2668_p3 = scmp.lt.s32.totalorder %s1868_s24, %s1868_s24 }
  0xc2   :  { %859 = vmatpush1.bf16.msra.mxu1 %v2262_v32  ;;  %807 = vmatprep.subr.bf16.mxu0 %v2263_v33  ;;  %v2345_v24 = vld [vmem:[#allocation6 + $0x20c] ss:$16 sps:$4 sm:$0xff]   ;;  %v2343_v25 = vld [vmem:[#allocation6 + $0x208] ss:$16 sps:$4 sm:$0xff]   ;;  %p2664_p2 = scmp.ne.s32.totalorder %s1868_s24, %s2663_s2  ;;  %p2669_p4 = scmp.lt.s32.totalorder %s2663_s2, %s2663_s2 }
  0xc3   :  { %897 = vmatprep.subr.bf16.mxu1 %v2268_v34  ;;  %v2348_v26 = vld [vmem:[#allocation6 + $0x22c] ss:$16 sps:$4 sm:$0xff]   ;;  %v2346_v27 = vld [vmem:[#allocation6 + $0x228] ss:$16 sps:$4 sm:$0xff]  }
  0xc4   :  { %v2351_v28 = vld [vmem:[#allocation6 + $0x24c] ss:$16 sps:$4 sm:$0xff]   ;;  %v2349_v29 = vld [vmem:[#allocation6 + $0x248] ss:$16 sps:$4 sm:$0xff]   ;;  %p2670_p5 = por %p2669_p4, %p2668_p3 }
  0xc5   :  { %877 = vmatmul.mubr.bf16.vlgmr.msra.gmra.mrb[0].mxu1 %v2893_v35  ;;  %808 = vmatpush1.bf16.msra.mxu0 %v2269_v37  ;;  %v2354_v30 = vld [vmem:[#allocation6 + $0x26c] ss:$16 sps:$4 sm:$0xff]   ;;  %v2352_v31 = vld [vmem:[#allocation6 + $0x268] ss:$16 sps:$4 sm:$0xff]  }
  0xc6   :  { %898 = vmatpush1.bf16.msra.mxu1 %v2266_v36  ;;  %809 = vmatprep.subr.bf16.mxu0 %v2270_v38  ;;  %v2357_v32 = vld [vmem:[#allocation6 + $0x28c] ss:$16 sps:$4 sm:$0xff]   ;;  %v2355_v33 = vld [vmem:[#allocation6 + $0x288] ss:$16 sps:$4 sm:$0xff]   ;;  %p2671_p6 = pnand %p2670_p5, %p2664_p2 }
  0xc7   :  { %899 = vmatprep.subr.bf16.mxu1 %v2274_v39  ;;  %886 = vmatprep.mubr.bf16.mxu1 %v2712_v0  ;;  %v2360_v34 = vld [vmem:[#allocation6 + $0x2ac] ss:$16 sps:$4 sm:$0xff]   ;;  %v2358_v36 = vld [vmem:[#allocation6 + $0x2a8] ss:$16 sps:$4 sm:$0xff]  }
  0xc8   :  { %v2363_v37 = vld [vmem:[#allocation6 + $0x2cc] ss:$16 sps:$4 sm:$0xff]   ;;  %v2361_v38 = vld [vmem:[#allocation6 + $0x2c8] ss:$16 sps:$4 sm:$0xff]  }
  0xc9   :  { %810 = vmatpush1.bf16.msra.mxu0 %v2275_v41  ;;  %v2366_v39 = vld [vmem:[#allocation6 + $0x2ec] ss:$16 sps:$4 sm:$0xff]  }
  0xca   :  { %900 = vmatpush1.bf16.msra.mxu1 %v2272_v40  ;;  %811 = vmatprep.subr.bf16.mxu0 %v2276_v42  ;;  %v2364_v40 = vld [vmem:[#allocation6 + $0x2e8] ss:$16 sps:$4 sm:$0xff]   ;;  %v2367_v41 = vld [vmem:[#allocation9] ss:$8 sps:$4 sm:$0xff]  }
  0xcb   :  { %901 = vmatprep.subr.bf16.mxu1 %v2280_v43  ;;  %v2369_v42 = vld [vmem:[#allocation9 + $0x4] ss:$8 sps:$4 sm:$0xff]   ;;  %v2372_v43 = vld [vmem:[#allocation9 + $0x14] ss:$8 sps:$4 sm:$0xff]  }
  0xcd   :  { %812 = vmatpush1.bf16.msra.mxu0 %v2281_v45  ;;  %887 = vmatmul.mubr.bf16.gmra.mrb[4].mxu1 %v2897_v59  ;;  %v2375_v45 = vld [vmem:[#allocation9 + $0x24] ss:$8 sps:$4 sm:$0xff]  }
  0xce   :  { %902 = vmatpush1.bf16.msra.mxu1 %v2278_v44  ;;  %813 = vmatprep.subr.bf16.mxu0 %v2282_v46  ;;  %v2370_v44 = vld [vmem:[#allocation9 + $0x10] ss:$8 sps:$4 sm:$0xff]   ;;  %v2373_v46 = vld [vmem:[#allocation9 + $0x20] ss:$8 sps:$4 sm:$0xff]  }
  0xcf   :  { %903 = vmatprep.subr.bf16.mxu1 %v2286_v47  ;;  %929 = vmatprep.mubr.bf16.mxu1 %v2314_v51  ;;  %v2378_v47 = vld [vmem:[#allocation9 + $0x34] ss:$8 sps:$4 sm:$0xff]   ;;  %v2387_v51 = vld [vmem:[#allocation9 + $0x64] ss:$8 sps:$4 sm:$0xff]  }
  0xd1   :  { %814 = vmatpush1.bf16.msra.mxu0 %v2287_v49  ;;  %v2384_v49 = vld [vmem:[#allocation9 + $0x54] ss:$8 sps:$4 sm:$0xff]  }
  0xd2   :  { %904 = vmatpush1.bf16.msra.mxu1 %v2284_v48  ;;  %815 = vmatprep.subr.bf16.mxu0 %v2288_v50  ;;  %v2376_v48 = vld [vmem:[#allocation9 + $0x30] ss:$8 sps:$4 sm:$0xff]  }
  0xd3   :  { %905 = vmatprep.subr.bf16.mxu1 %v2292_v52  ;;  %v2382_v50 = vld [vmem:[#allocation9 + $0x50] ss:$8 sps:$4 sm:$0xff]   ;;  %v2385_v52 = vld [vmem:[#allocation9 + $0x60] ss:$8 sps:$4 sm:$0xff]  }
  0xd5   :  { %816 = vmatpush1.bf16.msra.mxu0 %v2293_v54  ;;  %v2388_v54 = vld [vmem:[#allocation9 + $0x70] ss:$8 sps:$4 sm:$0xff]  }
  0xd6   :  { %906 = vmatpush1.bf16.msra.mxu1 %v2290_v53  ;;  %817 = vmatprep.subr.bf16.mxu0 %v2294_v55  ;;  %v2390_v53 = vld [vmem:[#allocation9 + $0x74] ss:$8 sps:$4 sm:$0xff]   ;;  %v2393_v55 = vld [vmem:[#allocation9 + $0x84] ss:$8 sps:$4 sm:$0xff]  }
  0xd7   :  { %907 = vmatprep.subr.bf16.mxu1 %v2298_v56  ;;  %v2391_v56 = vld [vmem:[#allocation9 + $0x80] ss:$8 sps:$4 sm:$0xff]  }
  0xd9   :  { %818 = vmatpush1.bf16.msra.mxu0 %v2299_v58  ;;  %v2394_v58 = vld [vmem:[#allocation9 + $0x90] ss:$8 sps:$4 sm:$0xff]  }
  0xda   :  { %908 = vmatpush1.bf16.msra.mxu1 %v2296_v57  ;;  %819 = vmatprep.subr.bf16.mxu0 %v2300_v60  ;;  %v2396_v57 = vld [vmem:[#allocation9 + $0x94] ss:$8 sps:$4 sm:$0xff]   ;;  %v2397_v60 = vld [vmem:[#allocation9 + $0xa0] ss:$8 sps:$4 sm:$0xff]  }
  0xdb   :  { %909 = vmatprep.subr.bf16.mxu1 %v2304_v61  ;;  %v2402_v61 = vld [vmem:[#allocation9 + $0xb4] ss:$8 sps:$4 sm:$0xff]  }
  0xdd   :  { %820 = vmatpush1.bf16.msra.mxu0 %v2305_v63 }
  0xde   :  { %910 = vmatpush1.bf16.msra.mxu1 %v2302_v62  ;;  %821 = vmatprep.subr.bf16.mxu0 %v2306_v1  ;;  %v2400_v62 = vld [vmem:[#allocation9 + $0xb0] ss:$8 sps:$4 sm:$0xff]   ;;  %v2405_v1 = vld [vmem:[#allocation9 + $0xc4] ss:$8 sps:$4 sm:$0xff]  }
  0xdf   :  { %911 = vmatprep.subr.bf16.mxu1 %v2310_v2 }
  0xe1   :  { %822 = vmatpush1.bf16.msra.mxu0 %v2311_v4 }
  0xe2   :  { %912 = vmatpush1.bf16.msra.mxu1 %v2308_v3  ;;  %1576 = vmatprep.subr.bf16.mxu0 %v2369_v42  ;;  %v2403_v3 = vld [vmem:[#allocation9 + $0xc0] ss:$8 sps:$4 sm:$0xff]  }
  0xe3   :  { %913 = vmatprep.subr.bf16.mxu1 %v2317_v5  ;;  %v2408_v5 = vld [vmem:[#allocation9 + $0xd4] ss:$8 sps:$4 sm:$0xff]  }
  0xe4   :  { %824 = vmatmul.mubr.bf16.vlgmr.msra.gmra.mrb[0].mxu0 %v2312_v6 }
  0xe5   :  { %833 = vmatprep.mubr.bf16.mxu0 %v2324_v8  ;;  %1577 = vmatpush1.bf16.msra.mxu0 %v2367_v41 }
  0xe6   :  { %914 = vmatpush1.bf16.msra.mxu1 %v2315_v7  ;;  %1578 = vmatprep.subr.bf16.mxu0 %v2372_v43  ;;  %v2406_v7 = vld [vmem:[#allocation9 + $0xd0] ss:$8 sps:$4 sm:$0xff]  }
  0xe7   :  { %915 = vmatprep.subr.bf16.mxu1 %v2320_v9  ;;  %v2409_v9 = vld [vmem:[#allocation9 + $0xe0] ss:$8 sps:$4 sm:$0xff]  }
  0xe9   :  { %1579 = vmatpush1.bf16.msra.mxu0 %v2370_v44 }
  0xea   :  { %916 = vmatpush1.bf16.msra.mxu1 %v2318_v10  ;;  %1580 = vmatprep.subr.bf16.mxu0 %v2375_v45  ;;  %v2414_v10 = vld [vmem:[#allocation9 + $0xf4] ss:$8 sps:$4 sm:$0xff]  }
  0xeb   :  { %917 = vmatprep.subr.bf16.mxu1 %v2323_v11  ;;  %v2412_v11 = vld [vmem:[#allocation9 + $0xf0] ss:$8 sps:$4 sm:$0xff]  }
  0xec   :  { %834 = vmatmul.mubr.bf16.gmra.mrb[4].mxu0 %v2326_v12 }
  0xed   :  { %1581 = vmatpush1.bf16.msra.mxu0 %v2373_v46 }
  0xee   :  { %918 = vmatpush1.bf16.msra.mxu1 %v2321_v13  ;;  %1582 = vmatprep.subr.bf16.mxu0 %v2378_v47  ;;  %v259_v13 = vlaneseq }
  0xef   :  { %919 = vmatprep.subr.bf16.mxu1 %v2329_v14 }
  0xf1   :  { %1583 = vmatpush1.bf16.msra.mxu0 %v2376_v48 }
  0xf2   :  { %920 = vmatpush1.bf16.msra.mxu1 %v2327_v15 }
  0xf3   :  { %921 = vmatprep.subr.bf16.mxu1 %v2333_v16  ;;  %v2904_v16 = vshrl.u32 %v259_v13, 7 }
  0xf6   :  { %922 = vmatpush1.bf16.msra.mxu1 %v2331_v17 }
  0xf7   :  { %923 = vmatprep.subr.bf16.mxu1 %v2336_v18 }
  0xfa   :  { %924 = vmatpush1.bf16.msra.mxu1 %v2334_v19  ;;  %v261_v19 = vsub.s32 0, %v2904_v16 }
  0xfb   :  { %925 = vmatprep.subr.bf16.mxu1 %v2339_v20  ;;  %v2907_v20 = vld [vmem:[#allocation8] sm:$0xf] }
  0xfe   :  { %926 = vmatpush1.bf16.msra.mxu1 %v2337_v21  ;;  %v265_v21 = vsub.s32 1, %v2904_v16 }
  0xff   :  { %927 = vmatprep.subr.bf16.mxu1 %v2342_v22  ;;  %v262_v22 = vrot.slane %v2907_v20, %v261_v19 }
 0x102   :  { %928 = vmatpush1.bf16.msra.mxu1 %v2340_v23  ;;  %v266_v23 = vrot.slane %v2907_v20, %v265_v21 }
 0x103   :  { %950 = vmatprep.subr.bf16.mxu1 %v2345_v24 }
 0x105   :  { %930 = vmatmul.mubr.bf16.vlgmr.msra.gmra.mrb[8].mxu1 %v2312_v6 }
 0x106   :  { %951 = vmatpush1.bf16.msra.mxu1 %v2343_v25  ;;  %939 = vmatprep.mubr.bf16.mxu1 %v2324_v8  ;;  %v2411_v8 = vld [vmem:[#allocation9 + $0xe4] ss:$8 sps:$4 sm:$0xff]  }
 0x107   :  { %952 = vmatprep.subr.bf16.mxu1 %v2348_v26 }
 0x10a   :  { %953 = vmatpush1.bf16.msra.mxu1 %v2346_v27 }
 0x10b   :  { %954 = vmatprep.subr.bf16.mxu1 %v2351_v28 }
 0x10d   :  { %940 = vmatmul.mubr.bf16.gmra.mrb[12].mxu1 %v2326_v12  ;;  %v2417_v12 = vld [vmem:[#allocation9 + $0x104] ss:$8 sps:$4 sm:$0xff]  }
 0x10e   :  { %955 = vmatpush1.bf16.msra.mxu1 %v2349_v29  ;;  %982 = vmatprep.mubr.bf16.mxu1 %v2712_v0 }
 0x10f   :  { %956 = vmatprep.subr.bf16.mxu1 %v2354_v30 }
 0x112   :  { %957 = vmatpush1.bf16.msra.mxu1 %v2352_v31 }
 0x113   :  { %958 = vmatprep.subr.bf16.mxu1 %v2357_v32 }
 0x116   :  { %959 = vmatpush1.bf16.msra.mxu1 %v2355_v33 }
 0x117   :  { %960 = vmatprep.subr.bf16.mxu1 %v2360_v34 }
 0x11a   :  { %961 = vmatpush1.bf16.msra.mxu1 %v2358_v36 }
 0x11b   :  { %962 = vmatprep.subr.bf16.mxu1 %v2363_v37 }
 0x11e   :  { %963 = vmatpush1.bf16.msra.mxu1 %v2361_v38 }
 0x11f   :  { %964 = vmatprep.subr.bf16.mxu1 %v2366_v39 }
 0x122   :  { %965 = vmatpush1.bf16.msra.mxu1 %v2364_v40 }
 0x125   :  { %983 = vmatmul.mubr.bf16.vlgmr.msra.gmra.mrb[8].mxu1 %v2893_v35  ;;  %v2381_v35 = vld [vmem:[#allocation9 + $0x44] ss:$8 sps:$4 sm:$0xff]  }
 0x126   :  { %992 = vmatprep.mubr.bf16.mxu1 %v2712_v0  ;;  %v2379_v0 = vld [vmem:[#allocation9 + $0x40] ss:$8 sps:$4 sm:$0xff]   ;;  %1584 = vmatprep.subr.bf16.mxu0 %v2381_v35 }
 0x127   :  { %1585 = vmatpush1.bf16.msra.mxu0 %v2379_v0 }
 0x128   :  { %1586 = vmatprep.subr.bf16.mxu0 %v2384_v49 }
 0x12b   :  { %1587 = vmatpush1.bf16.msra.mxu0 %v2382_v50 }
 0x12c   :  { %1588 = vmatprep.subr.bf16.mxu0 %v2387_v51 }
 0x12d   :  { %993 = vmatmul.mubr.bf16.gmra.mrb[12].mxu1 %v2897_v59  ;;  %v2399_v59 = vld [vmem:[#allocation9 + $0xa4] ss:$8 sps:$4 sm:$0xff]  }
 0x12f   :  { %1589 = vmatpush1.bf16.msra.mxu0 %v2385_v52 }
 0x130   :  { %1590 = vmatprep.subr.bf16.mxu0 %v2390_v53 }
 0x133   :  { %1591 = vmatpush1.bf16.msra.mxu0 %v2388_v54 }
 0x134   :  { %1592 = vmatprep.subr.bf16.mxu0 %v2393_v55 }
 0x137   :  { %1593 = vmatpush1.bf16.msra.mxu0 %v2391_v56 }
 0x138   :  { %1594 = vmatprep.subr.bf16.mxu0 %v2396_v57 }
 0x13b   :  { %1595 = vmatpush1.bf16.msra.mxu0 %v2394_v58 }
 0x13c   :  { %1596 = vmatprep.subr.bf16.mxu0 %v2399_v59 }
 0x13f   :  { %1597 = vmatpush1.bf16.msra.mxu0 %v2397_v60 }
 0x140   :  { %1598 = vmatprep.subr.bf16.mxu0 %v2402_v61 }
 0x143   :  { %1599 = vmatpush1.bf16.msra.mxu0 %v2400_v62 }
 0x144   :  { %1600 = vmatprep.subr.bf16.mxu0 %v2405_v1 }
 0x147   :  { %1601 = vmatpush1.bf16.msra.mxu0 %v2403_v3 }
 0x148   :  { %1602 = vmatprep.subr.bf16.mxu0 %v2408_v5 }
 0x14b   :  { %1603 = vmatpush1.bf16.msra.mxu0 %v2406_v7 }
 0x14c   :  { %1604 = vmatprep.subr.bf16.mxu0 %v2411_v8 }
 0x14f   :  { %1605 = vmatpush1.bf16.msra.mxu0 %v2409_v9 }
 0x150   :  { %1606 = vmatprep.subr.bf16.mxu0 %v2414_v10 }
 0x153   :  { %1607 = vmatpush1.bf16.msra.mxu0 %v2412_v11 }
 0x154   :  { %1617 = vmatprep.subr.bf16.mxu0 %v2417_v12 }
 0x198   :  { %v878_v63 = vpop.f32.mrb[0].mxu1 }
 0x199   :  { %v880_v2 = vpop.f32.mrb[1].mxu1 }
 0x19a   :  { %v882_v4 = vpop.f32.mrb[2].mxu1 }
 0x19b   :  { %v884_v6 = vpop.f32.mrb[3].mxu1 }
 0x1a0   :  { %v888_v14 = vpop.f32.mrb[4].mxu1 }
 0x1a1   :  { %v890_v15 = vpop.f32.mrb[5].mxu1 }
 0x1a2   :  { %v892_v17 = vpop.f32.mrb[6].mxu1 }
 0x1a3   :  { %v894_v18 = vpop.f32.mrb[7].mxu1 }
 0x1b7   :  { %v825_v24 = vpop.f32.mrb[0].mxu0 }
 0x1b8   :  { %v826_v25 = vadd.f32 %v825_v24, %v262_v22  ;;  %v827_v26 = vpop.f32.mrb[1].mxu0 }
 0x1b9   :  { %v828_v27 = vadd.f32 %v827_v26, %v266_v23  ;;  %v829_v28 = vpop.f32.mrb[2].mxu0 }
 0x1ba   :  { %v879_v29 = vadd.f32 %v878_v63, %v826_v25  ;;  %v830_v30 = vadd.f32 %v829_v28, %v262_v22  ;;  %v831_v31 = vpop.f32.mrb[3].mxu0 }
 0x1bb   :  { %v881_v32 = vadd.f32 %v880_v2, %v828_v27  ;;  %v832_v33 = vadd.f32 %v831_v31, %v266_v23 }
 0x1bc   :  { %v1003_v34 = vmul.f32 0.2, %v879_v29  ;;  %v883_v36 = vadd.f32 %v882_v4, %v830_v30 }
 0x1bd   :  { %v1004_v37 = vmul.f32 0.2, %v881_v32  ;;  %v885_v38 = vadd.f32 %v884_v6, %v832_v33 }
 0x1be   :  { %v1007_v39 = vmul.f32 0.2, %v883_v36  ;;  %v1019_v42 = vmax.f32 %v879_v29, %v1003_v34  ;;  %v1676_v34 = vld [vmem:[#allocation12 + $0x80] sm:$0xff] }
 0x1bf   :  { %v1008_v40 = vmul.f32 0.2, %v885_v38  ;;  %v835_v41 = vpop.f32.mrb[4].mxu0  ;;  %v1020_v46 = vmax.f32 %v881_v32, %v1004_v37  ;;  %v1660_v37 = vld [vmem:[#allocation12] sm:$0xff] }
 0x1c0   :  { %v1023_v43 = vmax.f32 %v883_v36, %v1007_v39  ;;  %v836_v44 = vadd.f32 %v835_v41, %v262_v22  ;;  %v837_v45 = vpop.f32.mrb[5].mxu0  ;;  %v1677_v36 = vld [vmem:[#allocation12 + $0x88] sm:$0xff]  ;;  %v1679_v41 = vld [vmem:[#allocation12 + $0x98] sm:$0xff] }
 0x1c1   :  { %v1024_v47 = vmax.f32 %v885_v38, %v1008_v40  ;;  %v838_v48 = vadd.f32 %v837_v45, %v266_v23  ;;  %v839_v35 = vpop.f32.mrb[6].mxu0  ;;  %v2112_v38 = vpack.c.bf16 %v1677_v36, %v1676_v34  ;;  %v1661_v39 = vld [vmem:[#allocation12 + $0x8] sm:$0xff]  ;;  %v1678_v40 = vld [vmem:[#allocation12 + $0x90] sm:$0xff]  ;;  %v1663_v45 = vld [vmem:[#allocation12 + $0x18] sm:$0xff] }
 0x1c2   :  { %v1036_v0 = vmax.f32 %v1019_v42, %v1023_v43  ;;  %v840_v49 = vadd.f32 %v839_v35, %v262_v22  ;;  %v889_v50 = vadd.f32 %v888_v14, %v836_v44  ;;  %v841_v51 = vpop.f32.mrb[7].mxu0  ;;  %v2114_v42 = vpack.c.bf16 %v1661_v39, %v1660_v37  ;;  %v1662_v44 = vld [vmem:[#allocation12 + $0x10] sm:$0xff] }
 0x1c3   :  { %v1043_v52 = vmax.f32 %v1020_v46, %v1024_v47  ;;  %v842_v53 = vadd.f32 %v841_v51, %v266_v23  ;;  %v891_v54 = vadd.f32 %v890_v15, %v838_v48  ;;  %v2116_v43 = vpack.c.bf16 %v1679_v41, %v1678_v40  ;;  %v1680_v46 = vld [vmem:[#allocation12 + $0xa0] sm:$0xff]  ;;  %2113 = vmatprep.subr.bf16.mxu1 %v2112_v38  ;;  %v1681_v47 = vld [vmem:[#allocation12 + $0xa8] sm:$0xff]  ;;  %v1682_v51 = vld [vmem:[#allocation12 + $0xb0] sm:$0xff] }
 0x1c4   :  { %v1037_v55 = vrot.slane %v1036_v0, 4  ;;  %v1011_v56 = vmul.f32 0.2, %v889_v50  ;;  %v893_v57 = vadd.f32 %v892_v17, %v840_v49  ;;  %2115 = vmatpush3.bf16.msra.mxu1 %v2114_v42  ;;  %v2118_v48 = vpack.c.bf16 %v1663_v45, %v1662_v44  ;;  %v1665_v49 = vld [vmem:[#allocation12 + $0x28] sm:$0xff] }
 0x1c5   :  { %v1044_v58 = vrot.slane %v1043_v52, 4  ;;  %v1012_v59 = vmul.f32 0.2, %v891_v54  ;;  %v895_v60 = vadd.f32 %v894_v18, %v842_v53  ;;  %2117 = vmatprep.subr.bf16.mxu1 %v2116_v43  ;;  %v2120_v35 = vpack.c.bf16 %v1681_v47, %v1680_v46 }
 0x1c6   :  { %v1038_v61 = vmax.f32 %v1036_v0, %v1037_v55  ;;  %v1027_v62 = vmax.f32 %v889_v50, %v1011_v56  ;;  %v1015_v63 = vmul.f32 0.2, %v893_v57  ;;  %v1664_v0 = vld [vmem:[#allocation12 + $0x20] sm:$0xff]  ;;  %v269_v50 = vsub.s32 2, %v2904_v16  ;;  %v1666_v56 = vld [vmem:[#allocation12 + $0x30] sm:$0xff] }
 0x1c7   :  { %v1045_v1 = vmax.f32 %v1043_v52, %v1044_v58  ;;  %v1028_v2 = vmax.f32 %v891_v54, %v1012_v59  ;;  %v1016_v3 = vmul.f32 0.2, %v895_v60  ;;  %v1683_v52 = vld [vmem:[#allocation12 + $0xb8] sm:$0xff]  ;;  %v273_v53 = vsub.s32 3, %v2904_v16  ;;  %v1684_v59 = vld [vmem:[#allocation12 + $0xc0] sm:$0xff] }
 0x1c8   :  { %v1039_v4 = vrot.slane %v1038_v61, 2  ;;  %v1031_v5 = vmax.f32 %v893_v57, %v1015_v63  ;;  %2119 = vmatpush3.bf16.msra.mxu1 %v2118_v48  ;;  %v2122_v54 = vpack.c.bf16 %v1665_v49, %v1664_v0  ;;  %v2124_v55 = vpack.c.bf16 %v1683_v52, %v1682_v51  ;;  %v1667_v57 = vld [vmem:[#allocation12 + $0x38] sm:$0xff] }
 0x1c9   :  { %v1046_v6 = vrot.slane %v1045_v1, 2  ;;  %v1032_v7 = vmax.f32 %v895_v60, %v1016_v3  ;;  %2121 = vmatprep.subr.bf16.mxu1 %v2120_v35  ;;  %v270_v58 = vrot.slane %v2907_v20, %v269_v50  ;;  %v1685_v60 = vld [vmem:[#allocation12 + $0xc8] sm:$0xff] }
 0x1ca   :  { %v1040_v8 = vmax.f32 %v1038_v61, %v1039_v4  ;;  %v1064_v9 = vmax.f32 %v1027_v62, %v1031_v5  ;;  %v274_v61 = vrot.slane %v2907_v20, %v273_v53  ;;  %v2126_v62 = vpack.c.bf16 %v1667_v57, %v1666_v56  ;;  %v1669_v3 = vld [vmem:[#allocation12 + $0x48] sm:$0xff] }
 0x1cb   :  { %v1047_v10 = vmax.f32 %v1045_v1, %v1046_v6  ;;  %v1071_v11 = vmax.f32 %v1028_v2, %v1032_v7  ;;  %v2128_v1 = vpack.c.bf16 %v1685_v60, %v1684_v59  ;;  %v1668_v2 = vld [vmem:[#allocation12 + $0x40] sm:$0xff]  ;;  %v1686_v6 = vld [vmem:[#allocation12 + $0xd0] sm:$0xff]  ;;  %v1687_v7 = vld [vmem:[#allocation12 + $0xd8] sm:$0xff]  ;;  %v2713_v53 = vmov 1983009808  }
 0x1cc   :  { %v1041_v12 = vrot.slane %v1040_v8, 1  ;;  %v1065_v13 = vrot.slane %v1064_v9, 4  ;;  %2123 = vmatpush3.bf16.msra.mxu1 %v2122_v54  ;;  %v1103_v54 = vunpack.c.l.s4 %v2713_v53  ;;  %v2427_v53 = vld [vmem:[#allocation9 + $0x140] ss:$8 sps:$4 sm:$0xff]  }
 0x1cd   :  { %v1048_v14 = vrot.slane %v1047_v10, 1  ;;  %v1072_v15 = vrot.slane %v1071_v11, 4  ;;  %2125 = vmatprep.subr.bf16.mxu1 %v2124_v55 }
 0x1ce   :  { %v2916_v17 = vmax.f32 %v1040_v8, %v1041_v12  ;;  %v1066_v18 = vmax.f32 %v1064_v9, %v1065_v13  ;;  %v2130_v13 = vpack.c.bf16 %v1669_v3, %v1668_v2  ;;  %v1104_v3 = vunpack.c.0.s8 %v1103_v54  ;;  %v2432_v54 = vld [vmem:[#allocation9 + $0x154] ss:$8 sps:$4 sm:$0xff]  }
 0x1cf   :  { %v2918_v22 = vmax.f32 %v1047_v10, %v1048_v14  ;;  %v1073_v23 = vmax.f32 %v1071_v11, %v1072_v15  ;;  %v2132_v15 = vpack.c.bf16 %v1687_v7, %v1686_v6 }
 0x1d0   :  { %v1067_v24 = vrot.slane %v1066_v18, 2  ;;  %2127 = vmatpush3.bf16.msra.mxu1 %v2126_v62 }
 0x1d1   :  { %v1100_v25 = vcombine.low %v2916_v17, %v2918_v22  ;;  %v1074_v26 = vrot.slane %v1073_v23, 2  ;;  %2129 = vmatprep.subr.bf16.mxu1 %v2128_v1 }
 0x1d2   :  { %v1068_v27 = vmax.f32 %v1066_v18, %v1067_v24  ;;  %v1670_v18 = vld [vmem:[#allocation12 + $0x50] sm:$0xff] }
 0x1d3   :  { %v1075_v28 = vmax.f32 %v1073_v23, %v1074_v26  ;;  %v1671_v23 = vld [vmem:[#allocation12 + $0x58] sm:$0xff]  ;;  %v1688_v26 = vld [vmem:[#allocation12 + $0xe0] sm:$0xff] }
 0x1d4   :  { %v1069_v29 = vrot.slane %v1068_v27, 1  ;;  %2131 = vmatpush3.bf16.msra.mxu1 %v2130_v13  ;;  %v2134_v34 = vpack.c.bf16 %v1671_v23, %v1670_v18 }
 0x1d5   :  { %v1076_v30 = vrot.slane %v1075_v28, 1  ;;  %2133 = vmatprep.subr.bf16.mxu1 %v2132_v15 }
 0x1d6   :  { %v2922_v31 = vmax.f32 %v1068_v27, %v1069_v29  ;;  %v1689_v27 = vld [vmem:[#allocation12 + $0xe8] sm:$0xff] }
 0x1d7   :  { %v2924_v32 = vmax.f32 %v1075_v28, %v1076_v30  ;;  %v2136_v39 = vpack.c.bf16 %v1689_v27, %v1688_v26 }
 0x1d8   :  { %2135 = vmatpush3.bf16.msra.mxu1 %v2134_v34 }
 0x1d9   :  { %v1117_v33 = vcombine.low %v2922_v31, %v2924_v32  ;;  %2137 = vmatprep.subr.bf16.mxu1 %v2136_v39 }
 0x1f8   :  { %v984_v63 = vpop.f32.mrb[8].mxu1 }
 0x1f9   :  { %v2172_v4 = vadd.f32 %v984_v63, %v270_v58  ;;  %v986_v5 = vpop.f32.mrb[9].mxu1 }
 0x1fa   :  { %v2173_v8 = vadd.f32 %v986_v5, %v274_v61  ;;  %v988_v9 = vpop.f32.mrb[10].mxu1 }
 0x1fb   :  { %v1005_v10 = vmul.f32 0.2, %v2172_v4  ;;  %v2174_v11 = vadd.f32 %v988_v9, %v270_v58  ;;  %v990_v12 = vpop.f32.mrb[11].mxu1 }
 0x1fc   :  { %v1006_v14 = vmul.f32 0.2, %v2173_v8  ;;  %v2175_v20 = vadd.f32 %v990_v12, %v274_v61 }
 0x1fd   :  { %v1009_v24 = vmul.f32 0.2, %v2174_v11  ;;  %v1021_v29 = vmax.f32 %v2172_v4, %v1005_v10 }
 0x1fe   :  { %v1010_v28 = vmul.f32 0.2, %v2175_v20  ;;  %v1022_v36 = vmax.f32 %v2173_v8, %v1006_v14 }
 0x1ff   :  { %v1025_v30 = vmax.f32 %v2174_v11, %v1009_v24  ;;  %v1107_v11 = vsub.s32 %v1104_v3, %v2904_v16  ;;  %v2445_v3 = vld [vmem:[#allocation9 + $0x1a0] ss:$8 sps:$4 sm:$0xff]  }
 0x200   :  { %v1026_v37 = vmax.f32 %v2175_v20, %v1010_v28  ;;  %v994_v38 = vpop.f32.mrb[12].mxu1  ;;  %v1774_v16 = vld [vmem:[#allocation15 + $0x20] sm:$0xff] }
 0x201   :  { %v1050_v40 = vmax.f32 %v1021_v29, %v1025_v30  ;;  %v2176_v41 = vadd.f32 %v994_v38, %v270_v58  ;;  %v996_v42 = vpop.f32.mrb[13].mxu1  ;;  %v1108_v23 = vrot.slane %v1100_v25, %v1107_v11 }
 0x202   :  { %v1057_v43 = vmax.f32 %v1022_v36, %v1026_v37  ;;  %v2177_v44 = vadd.f32 %v996_v42, %v274_v61  ;;  %v998_v45 = vpop.f32.mrb[14].mxu1  ;;  %v1125_v37 = vrot.slane %v1117_v33, %v1107_v11  ;;  %v2420_v33 = vld [vmem:[#allocation9 + $0x114] ss:$8 sps:$4 sm:$0xff]  }
 0x203   :  { %v1051_v46 = vrot.slane %v1050_v40, 4  ;;  %v1013_v47 = vmul.f32 0.2, %v2176_v41  ;;  %v2178_v48 = vadd.f32 %v998_v45, %v270_v58  ;;  %v1000_v35 = vpop.f32.mrb[15].mxu1 }
 0x204   :  { %v1058_v0 = vrot.slane %v1057_v43, 4  ;;  %v1014_v49 = vmul.f32 0.2, %v2177_v44  ;;  %v2179_v50 = vadd.f32 %v1000_v35, %v274_v61  ;;  %v2418_v35 = vld [vmem:[#allocation9 + $0x110] ss:$8 sps:$4 sm:$0xff]  }
 0x205   :  { %v1052_v51 = vmax.f32 %v1050_v40, %v1051_v46  ;;  %v1017_v52 = vmul.f32 0.2, %v2178_v48  ;;  %v1029_v59 = vmax.f32 %v2176_v41, %v1013_v47  ;;  %v2415_v47 = vld [vmem:[#allocation9 + $0x100] ss:$8 sps:$4 sm:$0xff]  }
 0x206   :  { %v1059_v55 = vmax.f32 %v1057_v43, %v1058_v0  ;;  %v1018_v56 = vmul.f32 0.2, %v2179_v50  ;;  %v1030_v63 = vmax.f32 %v2177_v44, %v1014_v49  ;;  %v2423_v0 = vld [vmem:[#allocation9 + $0x124] ss:$8 sps:$4 sm:$0xff]   ;;  %v2421_v49 = vld [vmem:[#allocation9 + $0x120] ss:$8 sps:$4 sm:$0xff]  }
 0x207   :  { %v1053_v57 = vrot.slane %v1052_v51, 2  ;;  %v1033_v60 = vmax.f32 %v2178_v48, %v1017_v52  ;;  %v2429_v52 = vld [vmem:[#allocation9 + $0x144] ss:$8 sps:$4 sm:$0xff]  }
 0x208   :  { %v1060_v62 = vrot.slane %v1059_v55, 2  ;;  %v1034_v1 = vmax.f32 %v2179_v50, %v1018_v56  ;;  %v2426_v50 = vld [vmem:[#allocation9 + $0x134] ss:$8 sps:$4 sm:$0xff]   ;;  %v2435_v56 = vld [vmem:[#allocation9 + $0x164] ss:$8 sps:$4 sm:$0xff]  }
 0x209   :  { %v1054_v2 = vmax.f32 %v1052_v51, %v1053_v57  ;;  %v1078_v58 = vmax.f32 %v1029_v59, %v1033_v60  ;;  %v2424_v51 = vld [vmem:[#allocation9 + $0x130] ss:$8 sps:$4 sm:$0xff]   ;;  %v2433_v57 = vld [vmem:[#allocation9 + $0x160] ss:$8 sps:$4 sm:$0xff]   ;;  %v2438_v59 = vld [vmem:[#allocation9 + $0x174] ss:$8 sps:$4 sm:$0xff]  }
 0x20a   :  { %v1061_v4 = vmax.f32 %v1059_v55, %v1060_v62  ;;  %v1085_v5 = vmax.f32 %v1030_v63, %v1034_v1  ;;  %v2430_v55 = vld [vmem:[#allocation9 + $0x150] ss:$8 sps:$4 sm:$0xff]   ;;  %v2441_v62 = vld [vmem:[#allocation9 + $0x184] ss:$8 sps:$4 sm:$0xff]   ;;  %v2439_v63 = vld [vmem:[#allocation9 + $0x180] ss:$8 sps:$4 sm:$0xff]  }
 0x20b   :  { %v1055_v6 = vrot.slane %v1054_v2, 1  ;;  %v1079_v61 = vrot.slane %v1078_v58, 4  ;;  %v2436_v60 = vld [vmem:[#allocation9 + $0x170] ss:$8 sps:$4 sm:$0xff]   ;;  %v2444_v1 = vld [vmem:[#allocation9 + $0x194] ss:$8 sps:$4 sm:$0xff]  }
 0x20c   :  { %v1062_v7 = vrot.slane %v1061_v4, 1  ;;  %v1086_v8 = vrot.slane %v1085_v5, 4 }
 0x20d   :  { %v1056_v9 = vmax.f32 %v1054_v2, %v1055_v6  ;;  %v1080_v10 = vmax.f32 %v1078_v58, %v1079_v61  ;;  %v2442_v2 = vld [vmem:[#allocation9 + $0x190] ss:$8 sps:$4 sm:$0xff]   ;;  %v2447_v58 = vld [vmem:[#allocation9 + $0x1a4] ss:$8 sps:$4 sm:$0xff]   ;;  %v2451_v61 = vld [vmem:[#allocation9 + $0x1c0] ss:$8 sps:$4 sm:$0xff]  }
 0x20e   :  { %v1063_v12 = vmax.f32 %v1061_v4, %v1062_v7  ;;  %v1087_v13 = vmax.f32 %v1085_v5, %v1086_v8  ;;  %v2450_v4 = vld [vmem:[#allocation9 + $0x1b4] ss:$8 sps:$4 sm:$0xff]   ;;  %v2448_v5 = vld [vmem:[#allocation9 + $0x1b0] ss:$8 sps:$4 sm:$0xff]   ;;  %v2453_v6 = vld [vmem:[#allocation9 + $0x1c4] ss:$8 sps:$4 sm:$0xff]  }
 0x20f   :  { %v1081_v14 = vrot.slane %v1080_v10, 2  ;;  %v2456_v7 = vld [vmem:[#allocation9 + $0x1d4] ss:$8 sps:$4 sm:$0xff]   ;;  %v2454_v8 = vld [vmem:[#allocation9 + $0x1d0] ss:$8 sps:$4 sm:$0xff]  }
 0x210   :  { %v1101_v20 = vcombine.low %v1056_v9, %v1063_v12  ;;  %v1088_v15 = vrot.slane %v1087_v13, 2  ;;  %v2459_v9 = vld [vmem:[#allocation9 + $0x1e4] ss:$8 sps:$4 sm:$0xff]   ;;  %v2460_v12 = vld [vmem:[#allocation9 + $0x1f0] ss:$8 sps:$4 sm:$0xff]  }
 0x211   :  { %v1082_v18 = vmax.f32 %v1080_v10, %v1081_v14  ;;  %v2457_v10 = vld [vmem:[#allocation9 + $0x1e0] ss:$8 sps:$4 sm:$0xff]  }
 0x212   :  { %v1115_v24 = vrot.slane %v1101_v20, %v1107_v11  ;;  %v1089_v26 = vmax.f32 %v1087_v13, %v1088_v15  ;;  %v1672_v14 = vld [vmem:[#allocation12 + $0x60] sm:$0xff]  ;;  %v1673_v20 = vld [vmem:[#allocation12 + $0x68] sm:$0xff] }
 0x213   :  { %v1083_v27 = vrot.slane %v1082_v18, 1  ;;  %v2138_v15 = vpack.c.bf16 %v1673_v20, %v1672_v14 }
 0x214   :  { %v1116_v28 = vcombine.low %v1108_v23, %v1115_v24  ;;  %v1090_v29 = vrot.slane %v1089_v26, 1  ;;  %v1691_v23 = vld [vmem:[#allocation12 + $0xf8] sm:$0xff] }
 0x215   :  { %v1084_v30 = vmax.f32 %v1082_v18, %v1083_v27  ;;  %2139 = vmatpush3.bf16.msra.mxu1 %v2138_v15  ;;  %v1690_v18 = vld [vmem:[#allocation12 + $0xf0] sm:$0xff]  ;;  %v1675_v27 = vld [vmem:[#allocation12 + $0x78] sm:$0xff] }
 0x216   :  { %v1091_v34 = vmax.f32 %v1089_v26, %v1090_v29  ;;  %v2140_v24 = vpack.c.bf16 %v1691_v23, %v1690_v18  ;;  %v1674_v26 = vld [vmem:[#allocation12 + $0x70] sm:$0xff]  ;;  %v2714_v29 = vmov 0.0|0.0  }
 0x218   :  { %v1118_v36 = vcombine.low %v1084_v30, %v1091_v34  ;;  %2141 = vmatprep.subr.bf16.mxu1 %v2140_v24  ;;  %v1244_v30 = vld [vmem:[#allocation11] sm:$0x3] }
 0x219   :  { %v1249_v34 = vrot.slane %v1244_v30, %v261_v19 }
 0x21a   :  { %v1132_v38 = vrot.slane %v1118_v36, %v1107_v11  ;;  %v1253_v36 = vrot.slane %v1244_v30, %v265_v21  ;;  %v1775_v21 = vld [vmem:[#allocation15 + $0x28] sm:$0xff] }
 0x21c   :  { %v1133_v39 = vcombine.low %v1125_v37, %v1132_v38 }
 0x21e   :  { %v1138_v40 = vrot.slane %v1133_v39, 7 }
 0x220   :  { %v1140_v17 = vsel %vm1139_vm0, %v1138_v40, %v1116_v28  ;;  %v2142_v28 = vpack.c.bf16 %v1675_v27, %v1674_v26 }
 0x221   :  { %v1142_v22 = vsel %vm1141_vm1, %v1138_v40, %v1140_v17  ;;  %v1771_v17 = vld [vmem:[#allocation15 + $0x8] sm:$0xff] }
 0x222   :  { %v1144_v25 = vsel %vm1143_vm2, %v1138_v40, %v1142_v22  ;;  %2143 = vmatpush3.bf16.msra.mxu1 %v2142_v28 }
 0x223   :  { %v1146_v41 = vsel %vm1145_vm3, %v1138_v40, %v1144_v25  ;;  %2144 = vmatprep.subr.bf16.mxu1 %v2714_v29  ;;  %v1770_v40 = vld [vmem:[#allocation15] sm:$0xff] }
 0x224   :  { %v1162_v42 = vrot.slane %v1146_v41, %v1107_v11  ;;  %v1155_v43 = vcombine.high %v1146_v41, %v1146_v41 }
 0x226   :  { %v1170_v44 = vcombine.high %v1162_v42, %v1162_v42  ;;  %v2939_v45 = vrot.slane %v1155_v43, %v1107_v11  ;;  %v1176_v32 = vpack.c.bf16 %v1162_v42, %v1162_v42  ;;  %v2462_v11 = vld [vmem:[#allocation9 + $0x1f4] ss:$8 sps:$4 sm:$0xff]   ;;  %v2145_v43 = vpack.c.bf16 %v1771_v17, %v1770_v40 }
 0x228   :  { %v1177_v46 = vpack.c.bf16 %v1170_v44, %v1170_v44  ;;  %v1171_v31 = vcombine.high %v2939_v45, %v2939_v45  ;;  %v1178_v13 = vpack.c.bf16 %v2939_v45, %v2939_v45  ;;  %v1772_v45 = vld [vmem:[#allocation15 + $0x10] sm:$0xff] }
 0x22a   :  { %1608 = vmatprep.mubr.bf16.mxu0 %v1177_v46  ;;  %v1179_v48 = vpack.c.bf16 %v1171_v31, %v1171_v31  ;;  %v1773_v46 = vld [vmem:[#allocation15 + $0x18] sm:$0xff]  ;;  %v1776_v31 = vld [vmem:[#allocation15 + $0x30] sm:$0xff] }
 0x22b   :  { %1609 = vmatmul.mubr.bf16.vlgmr.msra.gmra.mrb[8].mxu0 %v1176_v32  ;;  %v2148_v19 = vpack.c.bf16 %v1773_v46, %v1772_v45  ;;  %v1777_v32 = vld [vmem:[#allocation15 + $0x38] sm:$0xff] }
 0x22c   :  { %1618 = vmatpush1.bf16.msra.mxu0 %v2415_v47  ;;  %1649 = vmatprep.mubr.bf16.mxu0 %v1179_v48  ;;  %v2151_v47 = vpack.c.bf16 %v1775_v21, %v1774_v16  ;;  %v2716_v48 = vmov 0.0  }
 0x22d   :  { %1619 = vmatprep.subr.bf16.mxu0 %v2420_v33  ;;  %v2154_v33 = vpack.c.bf16 %v1777_v32, %v1776_v31 }
 0x230   :  { %1620 = vmatpush1.bf16.msra.mxu0 %v2418_v35 }
 0x231   :  { %1621 = vmatprep.subr.bf16.mxu0 %v2423_v0  ;;  %v2046_v0 = vld [vmem:[#allocation14] ss:$0 sm:$0xff] }
 0x234   :  { %1622 = vmatpush1.bf16.msra.mxu0 %v2421_v49 }
 0x235   :  { %1623 = vmatprep.subr.bf16.mxu0 %v2426_v50 }
 0x238   :  { %1624 = vmatpush1.bf16.msra.mxu0 %v2424_v51 }
 0x239   :  { %1625 = vmatprep.subr.bf16.mxu0 %v2429_v52 }
 0x23c   :  { %1626 = vmatpush1.bf16.msra.mxu0 %v2427_v53  ;;  %v2047_v53 = vld [vmem:[#allocation17] ss:$0 sm:$0xff] }
 0x23d   :  { %1627 = vmatprep.subr.bf16.mxu0 %v2432_v54 }
 0x240   :  { %1628 = vmatpush1.bf16.msra.mxu0 %v2430_v55 }
 0x241   :  { %1629 = vmatprep.subr.bf16.mxu0 %v2435_v56 }
 0x244   :  { %1630 = vmatpush1.bf16.msra.mxu0 %v2433_v57 }
 0x245   :  { %1631 = vmatprep.subr.bf16.mxu0 %v2438_v59 }
 0x248   :  { %1632 = vmatpush1.bf16.msra.mxu0 %v2436_v60 }
 0x249   :  { %1633 = vmatprep.subr.bf16.mxu0 %v2441_v62 }
 0x24c   :  { %1634 = vmatpush1.bf16.msra.mxu0 %v2439_v63 }
 0x24d   :  { %1635 = vmatprep.subr.bf16.mxu0 %v2444_v1 }
 0x250   :  { %1636 = vmatpush1.bf16.msra.mxu0 %v2442_v2 }
 0x251   :  { %1637 = vmatprep.subr.bf16.mxu0 %v2447_v58 }
 0x254   :  { %1638 = vmatpush1.bf16.msra.mxu0 %v2445_v3 }
 0x255   :  { %1639 = vmatprep.subr.bf16.mxu0 %v2450_v4 }
 0x258   :  { %1640 = vmatpush1.bf16.msra.mxu0 %v2448_v5 }
 0x259   :  { %1641 = vmatprep.subr.bf16.mxu0 %v2453_v6 }
 0x25c   :  { %1642 = vmatpush1.bf16.msra.mxu0 %v2451_v61 }
 0x25d   :  { %1643 = vmatprep.subr.bf16.mxu0 %v2456_v7 }
 0x260   :  { %1644 = vmatpush1.bf16.msra.mxu0 %v2454_v8 }
 0x261   :  { %1645 = vmatprep.subr.bf16.mxu0 %v2459_v9 }
 0x264   :  { %1646 = vmatpush1.bf16.msra.mxu0 %v2457_v10 }
 0x265   :  { %1647 = vmatprep.subr.bf16.mxu0 %v2462_v11 }
 0x268   :  { %1648 = vmatpush1.bf16.msra.mxu0 %v2460_v12 }
 0x26b   :  { %1650 = vmatmul.mubr.bf16.vlgmr.msra.gmra.mrb[8].mxu0 %v1178_v13 }
 0x33e   :  { %v1651_v37 = vpop.f32.mrb[8].mxu0 }
 0x33f   :  { %v2180_v38 = vadd.f32 %v1651_v37, %v1249_v34  ;;  %v1653_v39 = vpop.f32.mrb[9].mxu0 }
 0x340   :  { %v2181_v22 = vadd.f32 %v1653_v39, %v1253_v36  ;;  %v1655_v25 = vpop.f32.mrb[10].mxu0 }
 0x341   :  { %v1656_v41 = vpop.f32.mrb[11].mxu0  ;;  %v1658_v44 = vmax.f32 %v2180_v38, 0.0 }
 0x342   :  { %v1659_v42 = vmax.f32 %v2181_v22, 0.0 }
 0x344   :  { %1763 = vmatprep.mubr.f32.mxu1 %v1659_v42 }
 0x345   :  { %1764 = vmatmul.mubr.f32.vlgmr.msra.gmra.mrb[16].mxu1 %v1658_v44 }
 0x346   :  { %2146 = vmatpush3.bf16.msra.mxu1 %v2145_v43  ;;  %2109 = vmatprep.mubr.msk.f32.mxu1 %vm2715_vm4, %v2716_v48 }
 0x347   :  { %2147 = vmatprep.subr.bf16.mxu1 %v2714_v29 }
 0x34a   :  { %2149 = vmatpush3.bf16.msra.mxu1 %v2148_v19 }
 0x34b   :  { %2150 = vmatprep.subr.bf16.mxu1 %v2714_v29 }
 0x34e   :  { %2152 = vmatpush3.bf16.msra.mxu1 %v2151_v47 }
 0x34f   :  { %2153 = vmatprep.subr.bf16.mxu1 %v2714_v29 }
 0x352   :  { %2155 = vmatpush3.bf16.msra.mxu1 %v2154_v33 }
 0x418   :  { %v2081_v35 = vpop.f32.mrb[16].mxu1 }
 0x419   :  { %v2082_v49 = vpop.f32.mrb[17].mxu1 }
 0x41a   :  { %v2083_v50 = vadd.f32 %v2082_v49, %v2081_v35 }
 0x41c   :  { %v1766_v51 = vadd.f32 %v2083_v50, %v2046_v0 }
 0x41e   :  { %v1769_v52 = vmax.f32 %v1766_v51, 0.0 }
 0x420   :  { %2110 = vmatmul.mubr.msk.f32.vlgmr.msra.gmra.mrb[18].mxu1 %vm1785_vm5, %v1769_v52 }
 0x4f3   :  { %v1855_v54 = vpop.f32.mrb[18].mxu1 }
 0x4f4   :  { %v1856_v55 = vadd.f32 %v2047_v53, %v1855_v54  ;;  %v2111_v56 = vpop.f32.mrb[19].mxu1 }
 0x4f6   :  { %2463 = vtanh.f32 %v1856_v55 }
 0x500   :  { %v2464_v57 = vpop.eup %2463 }
 0x501   :  { %1860 = vst [vmem:[#allocation18] sm:$0x3] %v2464_v57 }
 0x502   :  { %2674 = shalt.err (!%p2671_p6)
}
 0x503   :  { %s2675_s10 = scalar_lea.hbm %s2970_s9, 32 }
 0x504   :  { %p2676_p7 = scmp.ne.s32.totalorder %s2970_s9, %s2675_s10  ;;  %p2679_p8 = scmp.lt.u32.totalorder %s2675_s10, %s2970_s9 }
 0x506   :  { %p2681_p9 = pnand %p2679_p8, %p2676_p7 }
 0x508   :  { %2684 = shalt.err (!%p2681_p9)
}
 0x509   :  { %1870 = dma.vmem_to_hbm [thread:$0]  %s1868_s24, 32, %s2970_s9, [#allocation5]  }
 0x50a   :  { %2695 = dma.done.wait [#allocation5], 32  }
 0x50b   :  { %2696 = vsyncadd [#allocation5], 4294967264 }
 0x50c   :  { %1874 = vsyncpa [#allocation4], 1 }
 0x50d   :  { %1875 = vsyncpa [#allocation7], 1 }
 0x50e   :  { %1876 = vsyncpa [#allocation10], 1 }
 0x50f   :  { %1877 = vsyncpa [#allocation13], 1 }
 0x510   :  { %1878 = vsyncpa [#allocation16], 1 }
 0x511   :  { %1879 = vsyncpa [#allocation5], 1 }

</bundles_post_ra>
